<compile_context>
chip_gen: v6e
topology: v6e:2x2x1
jax: 0.10.0
libtpu: 0.0.40
codegen_flags: <defaults>
</compile_context>

<pallas_src>
import functools

import jax
import jax.numpy as jnp
from jax.experimental import pallas as pl
from jax.experimental.pallas import tpu as pltpu

PATCH = 14  # padding_factor / ViT patch size
_NEG_BIG = -1e30


@functools.lru_cache(maxsize=None)
def _vmem_limit_bytes():
    """Generation-aware scoped-VMEM limit (perf review: v5e/v6e ~100MB, v7x <=56MB)."""
    cap = None
    try:
        cap = int(pltpu.get_tpu_info().vmem_capacity_bytes)
    except Exception:
        cap = None
    if cap is None:
        try:
            kind = jax.devices()[0].device_kind.lower()
        except Exception:
            kind = ""
        cap = (64 if "v7" in kind else 128) * 1024 * 1024
    if cap >= 120 * 1024 * 1024:               # v5e / v6e: 128 MiB physical VMEM
        return 100 * 1024 * 1024
    return max(32 * 1024 * 1024,               # v7x: 64 MiB physical VMEM
               min(cap - 8 * 1024 * 1024, 56 * 1024 * 1024))


def _cp(*sem):
    return pltpu.CompilerParams(dimension_semantics=tuple(sem),
                                vmem_limit_bytes=_vmem_limit_bytes())


def _ru(x, m):
    return ((x + m - 1) // m) * m


def _pad2(x, rows, cols):
    r, c = x.shape
    if r == rows and c == cols:
        return x
    return jnp.pad(x, ((0, rows - r), (0, cols - c)))


def _gelu(x):
    # tanh approximation (see TODO above re: exact erf).
    return jax.nn.gelu(x, approximate=True)


def _pick_tk(K, max_tk=2048):
    """K tile that pads K only to the next multiple of 128 (no over-padding)."""
    Kp = _ru(K, 128)
    if Kp <= max_tk:
        return Kp, Kp
    for cand in range(512, 0, -128):
        if Kp % cand == 0:
            return cand, Kp
    return 128, Kp


# --------------------------------------------------------------------------
# Kernel 1: tiled matmul + bias (+ optional activation / fused residual),
#           f32 accumulator, resident full-width weight by default.
# --------------------------------------------------------------------------
def _matmul_kernel(a_ref, w_ref, b_ref, *rest, activation, has_residual):
    if has_residual:
        r_ref, o_ref, acc_ref = rest
    else:
        o_ref, acc_ref = rest

    @pl.when(pl.program_id(2) == 0)
    def _():
        acc_ref[...] = jnp.zeros_like(acc_ref)

    acc_ref[...] += jnp.dot(a_ref[...], w_ref[...],
                            preferred_element_type=jnp.float32)

    @pl.when(pl.program_id(2) == pl.num_programs(2) - 1)
    def _():
        acc = acc_ref[...] + b_ref[...].astype(jnp.float32)
        if activation == "gelu":
            acc = _gelu(acc)
        if has_residual:
            acc = acc + r_ref[...].astype(jnp.float32)
        o_ref[...] = acc.astype(o_ref.dtype)


def matmul_bias(a, w, bias, *, residual=None, activation=None,
                out_dtype=jnp.bfloat16, tm=256, tn=1024):
    """act(A @ W + bias) [+ residual]: bf16 inputs, f32 accumulation."""
    M, K = a.shape
    _, N = w.shape
    tm = min(tm, _ru(M, 8))
    tn = min(tn, _ru(N, 128))
    tk, Kp = _pick_tk(K)
    Mp, Np = _ru(M, tm), _ru(N, tn)
    a_p = _pad2(a.astype(jnp.bfloat16), Mp, Kp)
    w_p = _pad2(w.astype(jnp.bfloat16), Kp, Np)
    b_p = _pad2(bias.astype(jnp.float32), 1, Np)
    ins = [a_p, w_p, b_p]
    in_specs = [pl.BlockSpec((tm, tk), lambda i, j, k: (i, k)),
                pl.BlockSpec((tk, tn), lambda i, j, k: (k, j)),
                pl.BlockSpec((1, tn), lambda i, j, k: (0, j))]
    if residual is not None:
        ins.append(_pad2(residual.astype(jnp.bfloat16), Mp, Np))
        in_specs.append(pl.BlockSpec((tm, tn), lambda i, j, k: (i, j)))
    out = pl.pallas_call(
        functools.partial(_matmul_kernel, activation=activation,
                          has_residual=residual is not None),
        out_shape=jax.ShapeDtypeStruct((Mp, Np), out_dtype),
        grid=(Mp // tm, Np // tn, Kp // tk),
        in_specs=in_specs,
        out_specs=pl.BlockSpec((tm, tn), lambda i, j, k: (i, j)),
        scratch_shapes=[pltpu.VMEM((tm, tn), jnp.float32)],
        compiler_params=_cp("parallel", "parallel", "arbitrary"),
    )(*ins)
    return out[:M, :N]


# --------------------------------------------------------------------------
# Kernel 2: fused LayerNorm + matmul + bias.
# Grid is over rows only; the full (K, N) weight has a constant block index so
# it is DMA'd exactly once, and LN runs once per row tile (perf review items).
# --------------------------------------------------------------------------
def _ln_matmul_kernel(x_ref, g_ref, bta_ref, w_ref, b_ref, o_ref, *, activation):
    x = x_ref[...].astype(jnp.float32)
    mu = jnp.mean(x, axis=-1, keepdims=True)
    var = jnp.mean(jnp.square(x - mu), axis=-1, keepdims=True)
    y = ((x - mu) * jax.lax.rsqrt(var + 1e-6)          # DINOv2-style eps
         * g_ref[...] + bta_ref[...]).astype(jnp.bfloat16)
    acc = jnp.dot(y, w_ref[...], preferred_element_type=jnp.float32)
    acc = acc + b_ref[...].astype(jnp.float32)
    if activation == "gelu":
        acc = _gelu(acc)
    o_ref[...] = acc.astype(o_ref.dtype)


def ln_matmul_bias(x, gamma, beta, w, bias, *, activation=None,
                   out_dtype=jnp.bfloat16, tm=256):
    M, K = x.shape
    _, N = w.shape
    tm = min(tm, _ru(M, 8))
    Mp = _ru(M, tm)
    Np = _ru(N, 128)
    x_p = _pad2(x.astype(jnp.bfloat16), Mp, K)          # K kept exact for LN
    w_p = _pad2(w.astype(jnp.bfloat16), K, Np)
    b_p = _pad2(bias.astype(jnp.float32), 1, Np)
    g2 = gamma.reshape(1, K).astype(jnp.float32)
    bt2 = beta.reshape(1, K).astype(jnp.float32)
    out = pl.pallas_call(
        functools.partial(_ln_matmul_kernel, activation=activation),
        out_shape=jax.ShapeDtypeStruct((Mp, Np), out_dtype),
        grid=(Mp // tm,),
        in_specs=[pl.BlockSpec((tm, K), lambda i: (i, 0)),
                  pl.BlockSpec((1, K), lambda i: (0, 0)),
                  pl.BlockSpec((1, K), lambda i: (0, 0)),
                  pl.BlockSpec((K, Np), lambda i: (0, 0)),   # resident weight
                  pl.BlockSpec((1, Np), lambda i: (0, 0))],
        out_specs=pl.BlockSpec((tm, Np), lambda i: (i, 0)),
        compiler_params=_cp("parallel"),
    )(x_p, g2, bt2, w_p, b_p)
    return out[:M, :N]


# --------------------------------------------------------------------------
# Kernel 3: fused LN2 + fc1 + GELU + fc2 + residual, row-tiled, weights
# resident (constant block index -> fetched once per layer).
# TODO(synk): on v7x, pipeline_mode=pl.Buffered(1) or fp8 weights would halve
#             the FFN weight VMEM residency.
# --------------------------------------------------------------------------
def _mlp_kernel(x_ref, g_ref, bta_ref, w1_ref, b1_ref, w2_ref, b2_ref, o_ref):
    x = x_ref[...].astype(jnp.float32)
    mu = jnp.mean(x, axis=-1, keepdims=True)
    var = jnp.mean(jnp.square(x - mu), axis=-1, keepdims=True)
    y = ((x - mu) * jax.lax.rsqrt(var + 1e-6)
         * g_ref[...] + bta_ref[...]).astype(jnp.bfloat16)
    h = jnp.dot(y, w1_ref[...], preferred_element_type=jnp.float32)
    h = _gelu(h + b1_ref[...].astype(jnp.float32)).astype(jnp.bfloat16)
    out = jnp.dot(h, w2_ref[...], preferred_element_type=jnp.float32)
    out = out + b2_ref[...].astype(jnp.float32) + x      # residual in epilogue
    o_ref[...] = out.astype(o_ref.dtype)


def mlp_block(x, gamma, beta, w1, b1, w2, b2, *, out_dtype=jnp.bfloat16, tm=256):
    M, K = x.shape
    H = w1.shape[1]
    tm = min(tm, _ru(M, 8))
    Mp = _ru(M, tm)
    x_p = _pad2(x.astype(jnp.bfloat16), Mp, K)
    g2 = gamma.reshape(1, K).astype(jnp.float32)
    bt2 = beta.reshape(1, K).astype(jnp.float32)
    out = pl.pallas_call(
        _mlp_kernel,
        out_shape=jax.ShapeDtypeStruct((Mp, K), out_dtype),
        grid=(Mp // tm,),
        in_specs=[pl.BlockSpec((tm, K), lambda i: (i, 0)),
                  pl.BlockSpec((1, K), lambda i: (0, 0)),
                  pl.BlockSpec((1, K), lambda i: (0, 0)),
                  pl.BlockSpec((K, H), lambda i: (0, 0)),
                  pl.BlockSpec((1, H), lambda i: (0, 0)),
                  pl.BlockSpec((H, K), lambda i: (0, 0)),
                  pl.BlockSpec((1, K), lambda i: (0, 0))],
        out_specs=pl.BlockSpec((tm, K), lambda i: (i, 0)),
        compiler_params=_cp("parallel"),
    )(x_p, g2, bt2, w1.astype(jnp.bfloat16), b1.astype(jnp.float32),
      w2.astype(jnp.bfloat16), b2.astype(jnp.float32))
    return out[:M]


# --------------------------------------------------------------------------
# Kernel 4: flash-style blocked attention.
# Grid (B, heads, q_tiles, kv_tiles); kv axis is the "arbitrary" reduction
# axis with m/l/acc VMEM scratch (online softmax).  Head-major Q/K/V so every
# grid step DMAs one aligned (tile, dh) block.
# --------------------------------------------------------------------------
def _flash_attn_kernel(q_ref, k_ref, v_ref, o_ref, m_sc, l_sc, acc_sc,
                       *, scale, t_valid, tkv, need_mask):
    ki = pl.program_id(3)

    @pl.when(ki == 0)
    def _():
        m_sc[...] = jnp.full(m_sc.shape, _NEG_BIG, dtype=m_sc.dtype)
        l_sc[...] = jnp.zeros_like(l_sc)
        acc_sc[...] = jnp.zeros_like(acc_sc)

    q = q_ref[0, 0]                                       # (tq, dh) bf16
    k = k_ref[0, 0]                                       # (tkv, dh) bf16
    v = v_ref[0, 0]                                       # (tkv, dh) bf16
    s = jax.lax.dot_general(q, k, (((1,), (1,)), ((), ())),
                            preferred_element_type=jnp.float32) * scale
    if need_mask:
        kv_pos = ki * tkv + jax.lax.broadcasted_iota(jnp.int32, s.shape, 1)
        valid = kv_pos < t_valid
        s = jnp.where(valid, s, _NEG_BIG)

    m_prev = m_sc[...]
    m_new = jnp.maximum(m_prev, jnp.max(s, axis=-1, keepdims=True))
    alpha = jnp.exp(m_prev - m_new)
    p = jnp.exp(s - m_new)
    if need_mask:
        p = jnp.where(valid, p, 0.0)
    l_sc[...] = alpha * l_sc[...] + jnp.sum(p, axis=-1, keepdims=True)
    acc_sc[...] = alpha * acc_sc[...] + jnp.dot(p.astype(jnp.bfloat16), v,
                                                preferred_element_type=jnp.float32)
    m_sc[...] = m_new

    @pl.when(ki == pl.num_programs(3) - 1)
    def _():
        o_ref[0, 0] = (acc_sc[...] / l_sc[...]).astype(o_ref.dtype)


def flash_attention(q, k, v, *, tq=256, tkv=512):
    """q,k,v: (B, heads, T, dh) head-major -> (B, heads, T, dh) softmax(qk^T)v."""
    B, H, T, dh = q.shape
    scale = 1.0 / float(dh) ** 0.5
    tq = min(tq, _ru(T, 8))
    tkv = min(tkv, _ru(T, 8))
    Tq, Tk = _ru(T, tq), _ru(T, tkv)
    q_p = jnp.pad(q.astype(jnp.bfloat16), ((0, 0), (0, 0), (0, Tq - T), (0, 0)))
    k_p = jnp.pad(k.astype(jnp.bfloat16), ((0, 0), (0, 0), (0, Tk - T), (0, 0)))
    v_p = jnp.pad(v.astype(jnp.bfloat16), ((0, 0), (0, 0), (0, Tk - T), (0, 0)))
    out = pl.pallas_call(
        functools.partial(_flash_attn_kernel, scale=scale, t_valid=T,
                          tkv=tkv, need_mask=(Tk != T)),
        out_shape=jax.ShapeDtypeStruct((B, H, Tq, dh), jnp.bfloat16),
        grid=(B, H, Tq // tq, Tk // tkv),
        in_specs=[pl.BlockSpec((1, 1, tq, dh), lambda b, h, qi, ki: (b, h, qi, 0)),
                  pl.BlockSpec((1, 1, tkv, dh), lambda b, h, qi, ki: (b, h, ki, 0)),
                  pl.BlockSpec((1, 1, tkv, dh), lambda b, h, qi, ki: (b, h, ki, 0))],
        out_specs=pl.BlockSpec((1, 1, tq, dh), lambda b, h, qi, ki: (b, h, qi, 0)),
        scratch_shapes=[pltpu.VMEM((tq, 1), jnp.float32),
                        pltpu.VMEM((tq, 1), jnp.float32),
                        pltpu.VMEM((tq, dh), jnp.float32)],
        compiler_params=_cp("parallel", "parallel", "parallel", "arbitrary"),
    )(q_p, k_p, v_p)
    return out[:, :, :T, :]


# --------------------------------------------------------------------------
# Kernel 5: fused DPT readout + depth head, row-tiled over patch tokens.
#   fused = sum_i gelu(pt_i @ Wp_i + (ct_i @ Wc_i + b_i))   (cls term hoisted)
#   depth = head_w . fused + head_b                          (lane-dense out)
# --------------------------------------------------------------------------
def _decoder_kernel(*args, n_layers):
    pts = args[0:n_layers]
    clsbs = args[n_layers:2 * n_layers]
    wps = args[2 * n_layers:3 * n_layers]
    hw_ref, hb_ref, o_ref = args[3 * n_layers:]
    tp = o_ref.shape[2]
    dim = hw_ref.shape[1]
    fused = jnp.zeros((tp, dim), jnp.float32)
    for i in range(n_layers):
        z = jnp.dot(pts[i][0], wps[i][...], preferred_element_type=jnp.float32)
        z = z + clsbs[i][0].astype(jnp.float32)            # (1, dim) broadcast
        fused = fused + _gelu(z)
    # depth head as a (1, dim) x (tp, dim)^T contraction -> lane-dense (1, tp)
    depth = jax.lax.dot_general(hw_ref[...], fused, (((1,), (1,)), ((), ())),
                                preferred_element_type=jnp.float32)
    o_ref[0] = depth + hb_ref[...]


def dpt_decode(feature_tokens, readout, head_w, head_b, *, tp=256):
    n = len(feature_tokens)
    B, T, dim = feature_tokens[0].shape
    P = T - 1
    tp = min(tp, _ru(P, 8))
    Pp = _ru(P, tp)

    pts, clsbs, wps = [], [], []
    for i, f in enumerate(feature_tokens):
        pt = jnp.pad(f[:, 1:, :].astype(jnp.bfloat16),
                     ((0, 0), (0, Pp - P), (0, 0)))        # (B, Pp, dim)
        pts.append(pt)
        # Hoisted row-invariant class-token term: ct_i @ Wc_i + b_i  (B, 1, dim)
        ct = f[:, 0:1, :].astype(jnp.float32)
        clsb = jnp.einsum("bod,dk->bok", ct,
                          readout[i]["wc"].astype(jnp.float32)) + readout[i]["b"]
        clsbs.append(clsb.astype(jnp.float32))
        wps.append(readout[i]["wp"].astype(jnp.bfloat16))

    ins = pts + clsbs + wps + [head_w.astype(jnp.float32),
                               head_b.astype(jnp.float32)]
    in_specs = ([pl.BlockSpec((1, tp, dim), lambda b, pi: (b, pi, 0))] * n
                + [pl.BlockSpec((1, 1, dim), lambda b, pi: (b, 0, 0))] * n
                + [pl.BlockSpec((dim, dim), lambda b, pi: (0, 0))] * n
                + [pl.BlockSpec((1, dim), lambda b, pi: (0, 0)),
                   pl.BlockSpec((1, 1), lambda b, pi: (0, 0))])
    out = pl.pallas_call(
        functools.partial(_decoder_kernel, n_layers=n),
        out_shape=jax.ShapeDtypeStruct((B, 1, Pp), jnp.float32),
        grid=(B, Pp // tp),
        in_specs=in_specs,
        out_specs=pl.BlockSpec((1, 1, tp), lambda b, pi: (b, 0, pi)),
        compiler_params=_cp("parallel", "parallel"),
    )(*ins)
    return out.reshape(B, Pp)[:, :P]


# --------------------------------------------------------------------------
# Kernel 6: relu + separable bilinear resize  (Wh @ relu(D) @ Ww^T), bf16
# inputs / f32 accumulation; Ww^T is precomputed on the host.
# --------------------------------------------------------------------------
def _relu_resize_kernel(d_ref, wh_ref, wwt_ref, o_ref):
    d = jnp.maximum(d_ref[0], 0.0).astype(jnp.bfloat16)
    tmp = jnp.dot(wh_ref[...], d, preferred_element_type=jnp.float32)
    o_ref[0] = jnp.dot(tmp.astype(jnp.bfloat16), wwt_ref[...],
                       preferred_element_type=jnp.float32).astype(o_ref.dtype)


def relu_bilinear_resize(d, wh, wwt):
    B, ph, pw = d.shape
    Ho, Wo = wh.shape[0], wwt.shape[1]
    return pl.pallas_call(
        _relu_resize_kernel,
        out_shape=jax.ShapeDtypeStruct((B, Ho, Wo), jnp.float32),
        grid=(B,),
        in_specs=[pl.BlockSpec((1, ph, pw), lambda b: (b, 0, 0)),
                  pl.BlockSpec((Ho, ph), lambda b: (0, 0)),
                  pl.BlockSpec((pw, Wo), lambda b: (0, 0))],
        out_specs=pl.BlockSpec((1, Ho, Wo), lambda b: (b, 0, 0)),
        compiler_params=_cp("parallel"),
    )(d.astype(jnp.bfloat16), wh.astype(jnp.bfloat16), wwt.astype(jnp.bfloat16))


# --------------------------------------------------------------------------
# Host-side glue: interpolation matrices, patch extraction, params.
# --------------------------------------------------------------------------
def bilinear_matrix(out_size, in_size):
    """Row-stochastic matrix equivalent to F.interpolate(mode='bilinear',
    align_corners=False) along one axis."""
    scale = in_size / out_size
    i = jnp.arange(out_size, dtype=jnp.float32)
    src = jnp.clip((i + 0.5) * scale - 0.5, 0.0, float(in_size - 1))
    lo = jnp.floor(src)
    frac = src - lo
    lo = lo.astype(jnp.int32)
    hi = jnp.minimum(lo + 1, in_size - 1)
    rows = jnp.arange(out_size)
    W = jnp.zeros((out_size, in_size), jnp.float32)
    W = W.at[rows, lo].add(1.0 - frac)
    W = W.at[rows, hi].add(frac)
    return W


def extract_patches(x):
    """NCHW image -> (B, num_patches, C*14*14), Conv2d(k=14,s=14) flatten order."""
    B, C, H, W = x.shape
    ph, pw = H // PATCH, W // PATCH
    x = x.reshape(B, C, ph, PATCH, pw, PATCH)
    x = x.transpose(0, 2, 4, 1, 3, 5)
    return x.reshape(B, ph * pw, C * PATCH * PATCH)


def init_params(key, *, in_ch, dim, heads, n_layers, num_tokens, mlp_ratio=4):
    patch_dim = in_ch * PATCH * PATCH
    hidden = dim * mlp_ratio
    ks = iter(jax.random.split(key, 8 + 8 * n_layers))

    def w(shape, dtype=jnp.bfloat16, std=0.02):
        return (std * jax.random.normal(next(ks), shape,
                                        dtype=jnp.float32)).astype(dtype)

    p = {
        "pe_w": w((patch_dim, dim)),
        "pe_b": jnp.zeros((1, dim), jnp.float32),
        "cls": w((1, 1, dim), jnp.float32),
        "pos": w((1, num_tokens, dim), jnp.float32),
        "blocks": [],
        "readout": [],
        "head_w": w((1, dim), jnp.float32),   # depth head weight (row form)
        "head_b": jnp.zeros((1, 1), jnp.float32),
    }
    for _ in range(n_layers):
        p["blocks"].append({
            "ln1_g": jnp.ones((1, dim), jnp.float32),
            "ln1_b": jnp.zeros((1, dim), jnp.float32),
            "qkv_w": w((dim, 3 * dim)),
            "qkv_b": jnp.zeros((1, 3 * dim), jnp.float32),
            "proj_w": w((dim, dim)),
            "proj_b": jnp.zeros((1, dim), jnp.float32),
            "ln2_g": jnp.ones((1, dim), jnp.float32),
            "ln2_b": jnp.zeros((1, dim), jnp.float32),
            "fc1_w": w((dim, hidden)),
            "fc1_b": jnp.zeros((1, hidden), jnp.float32),
            "fc2_w": w((hidden, dim)),
            "fc2_b": jnp.zeros((1, dim), jnp.float32),
        })
        p["readout"].append({
            "wp": w((dim, dim)),    # acts on patch tokens
            "wc": w((dim, dim)),    # acts on the class token (concat split)
            "b": jnp.zeros((1, dim), jnp.float32),
        })
    return p


# --------------------------------------------------------------------------
# Forward pass (semantics of DepthAnythingNuke.forward).
# --------------------------------------------------------------------------
def depth_anything_forward(x, params, *, heads, n_layers):
    b, c, h, w = x.shape

    # PyTorch: if x.dtype == float32: x = x.half()  -> bf16 is the TPU half path
    x = x.astype(jnp.bfloat16)

    pad_h = ((h - 1) // PATCH + 1) * PATCH
    pad_w = ((w - 1) // PATCH + 1) * PATCH
    x = jnp.pad(x, ((0, 0), (0, 0), (0, pad_h - h), (0, pad_w - w)))
    patch_h, patch_w = pad_h // PATCH, pad_w // PATCH

    # ------------- encoder.get_intermediate_layers(x, n, return_class_token=True)
    patches = extract_patches(x)                         # (B, P, patch_dim) bf16
    B, P, pd = patches.shape
    dim = params["pe_w"].shape[1]
    dh = dim // heads

    tok = matmul_bias(patches.reshape(B * P, pd),
                      params["pe_w"], params["pe_b"]).reshape(B, P, dim)
    cls = jnp.broadcast_to(params["cls"], (B, 1, dim))
    tokens = (jnp.concatenate([cls, tok.astype(jnp.float32)], axis=1)
              + params["pos"]).astype(jnp.bfloat16)      # (B, T, dim)
    T = P + 1

    feats = []
    for i in range(n_layers):
        blk = params["blocks"][i]
        # fused LN1 + QKV projection (resident weight, LN once per row tile)
        qkv = ln_matmul_bias(tokens.reshape(B * T, dim), blk["ln1_g"],
                             blk["ln1_b"], blk["qkv_w"], blk["qkv_b"])
        # head-major split (aligned (T, dh) blocks per grid step in the kernel)
        qkv = qkv.reshape(B, T, 3, heads, dh)
        q = qkv[:, :, 0].transpose(0, 2, 1, 3)           # (B, heads, T, dh)
        k = qkv[:, :, 1].transpose(0, 2, 1, 3)
        v = qkv[:, :, 2].transpose(0, 2, 1, 3)
        # flash-style blocked attention
        attn = flash_attention(q, k, v)                  # (B, heads, T, dh)
        attn = attn.transpose(0, 2, 1, 3).reshape(B * T, dim)
        # dim-wide output projection with the residual fused in the epilogue
        tokens = matmul_bias(attn, blk["proj_w"], blk["proj_b"],
                             residual=tokens.reshape(B * T, dim)
                             ).reshape(B, T, dim)
        # fused LN2 + fc1 + GELU + fc2 + residual
        tokens = mlp_block(tokens.reshape(B * T, dim), blk["ln2_g"],
                           blk["ln2_b"], blk["fc1_w"], blk["fc1_b"],
                           blk["fc2_w"], blk["fc2_b"]).reshape(B, T, dim)
        feats.append(tokens)                              # (patch+cls tokens)

    # ------------- decoder(features, patch_h, patch_w): DPT readout + depth head
    depth = dpt_decode(feats, params["readout"],
                       params["head_w"], params["head_b"])   # (B, P) f32
    d = depth.reshape(B, patch_h, patch_w)

    # relu -> squeeze(1) -> [:, None] -> bilinear to (pad_h, pad_w) -> crop
    wh = bilinear_matrix(pad_h, patch_h)
    wwt = bilinear_matrix(pad_w, patch_w).T               # precomputed Ww^T
    up = relu_bilinear_resize(d, wh, wwt)                 # (B, pad_h, pad_w)
    return up[:, None, :h, :w]                            # (B, 1, h, w)


# --------------------------------------------------------------------------
if __name__ == "__main__":
    B, C, H, W = 2, 3, 16, 16        # RGB (mean/std in the module imply 3 ch)
    DIM, HEADS, N_LAYERS = 32, 2, 2  # n = 2 intermediate layers

    key = jax.random.PRNGKey(0)
    x = jax.random.uniform(key, (B, C, H, W), dtype=jnp.float32)

    pad_h = ((H - 1) // PATCH + 1) * PATCH
    pad_w = ((W - 1) // PATCH + 1) * PATCH
    num_tokens = (pad_h // PATCH) * (pad_w // PATCH) + 1

    params = init_params(jax.random.PRNGKey(42), in_ch=C, dim=DIM, heads=HEADS,
                         n_layers=N_LAYERS, num_tokens=num_tokens)

    fwd = jax.jit(functools.partial(depth_anything_forward,
                                    heads=HEADS, n_layers=N_LAYERS))
    out = jax.block_until_ready(fwd(x, params))

    assert out.shape == (B, 1, H, W), out.shape
    assert bool(jnp.all(jnp.isfinite(out)))
    assert bool(jnp.all(out >= 0.0))  # ReLU before the convex bilinear resize
    print("KERNEL_OK")
</pallas_src>

<mosaic_0001>
module attributes {stable_mosaic.version = 11 : i64} {
  func.func @_matmul_kernel(%arg0: i32, %arg1: i32, %arg2: i32, %arg3: memref<8x640xbf16, #tpu.memory_space<vmem>>, %arg4: memref<640x128xbf16, #tpu.memory_space<vmem>>, %arg5: memref<1x128xf32, #tpu.memory_space<vmem>>, %arg6: memref<8x128xbf16, #tpu.memory_space<vmem>>, %arg7: memref<8x128xf32, #tpu.memory_space<vmem>>) attributes {dimension_semantics = [#tpu.dimension_semantics<parallel>, #tpu.dimension_semantics<parallel>, #tpu.dimension_semantics<arbitrary>], iteration_bounds = array<i64: 1, 1, 1>, scalar_prefetch = 0 : i64, scratch_operands = 1 : i64, tpu.core_type = #tpu.core_type<tc>, window_params = [{transform_indices = @transform_0, window_bounds = array<i64: 8, 640>}, {transform_indices = @transform_1, window_bounds = array<i64: 640, 128>}, {transform_indices = @transform_2, window_bounds = array<i64: 1, 128>}, {transform_indices = @transform_3, window_bounds = array<i64: 8, 128>}]} {
    %c0_i32 = arith.constant 0 : i32
    %0 = arith.cmpi eq, %arg2, %c0_i32 : i32
    %1 = arith.extui %0 : i1 to i32
    %c0_i32_0 = arith.constant 0 : i32
    %2 = arith.cmpi ne, %1, %c0_i32_0 : i32
    scf.if %2 {
      %cst_10 = arith.constant 0.000000e+00 : f32
      %12 = vector.broadcast %cst_10 : f32 to vector<8x128xf32>
      %c0_11 = arith.constant 0 : index
      %c0_12 = arith.constant 0 : index
      %13 = vector.load %arg7[%c0_11, %c0_12] : memref<8x128xf32, #tpu.memory_space<vmem>>, vector<8x128xf32>
      tpu.vector_store %arg7[%c0_11, %c0_12], %12 {strides = array<i32>} : memref<8x128xf32, #tpu.memory_space<vmem>>, vector<8x128xf32>,
    } else {
    }
    %c0 = arith.constant 0 : index
    %c0_1 = arith.constant 0 : index
    %3 = vector.load %arg7[%c0, %c0_1] : memref<8x128xf32, #tpu.memory_space<vmem>>, vector<8x128xf32>
    %c0_2 = arith.constant 0 : index
    %c0_3 = arith.constant 0 : index
    %4 = vector.load %arg3[%c0_2, %c0_3] : memref<8x640xbf16, #tpu.memory_space<vmem>>, vector<8x640xbf16>
    %c0_4 = arith.constant 0 : index
    %c0_5 = arith.constant 0 : index
    %5 = vector.load %arg4[%c0_4, %c0_5] : memref<640x128xbf16, #tpu.memory_space<vmem>>, vector<640x128xbf16>
    %cst = arith.constant dense<0.000000e+00> : vector<8x128xf32>
    %6 = tpu.matmul %4, %5, %cst {dimension_numbers = #tpu.dot_dimension_numbers<[1], [0], [0], [1], [0, 0, 1, 1], [], []>} : vector<8x640xbf16>, vector<640x128xbf16>, vector<8x128xf32> -> vector<8x128xf32>
    %7 = arith.addf %3, %6 : vector<8x128xf32>
    %c0_6 = arith.constant 0 : index
    %c0_7 = arith.constant 0 : index
    %8 = vector.load %arg7[%c0_6, %c0_7] : memref<8x128xf32, #tpu.memory_space<vmem>>, vector<8x128xf32>
    tpu.vector_store %arg7[%c0_6, %c0_7], %7 {strides = array<i32>} : memref<8x128xf32, #tpu.memory_space<vmem>>, vector<8x128xf32>,
    %c0_i32_8 = arith.constant 0 : i32
    %9 = arith.cmpi eq, %arg2, %c0_i32_8 : i32
    %10 = arith.extui %9 : i1 to i32
    %c0_i32_9 = arith.constant 0 : i32
    %11 = arith.cmpi ne, %10, %c0_i32_9 : i32
    scf.if %11 {
      %c0_10 = arith.constant 0 : index
      %c0_11 = arith.constant 0 : index
      %12 = vector.load %arg7[%c0_10, %c0_11] : memref<8x128xf32, #tpu.memory_space<vmem>>, vector<8x128xf32>
      %c0_12 = arith.constant 0 : index
      %c0_13 = arith.constant 0 : index
      %13 = vector.load %arg5[%c0_12, %c0_13] : memref<1x128xf32, #tpu.memory_space<vmem>>, vector<1x128xf32>
      %14 = vector.broadcast %13 : vector<1x128xf32> to vector<8x128xf32>
      %15 = arith.addf %12, %14 : vector<8x128xf32>
      %16 = arith.truncf %15 : vector<8x128xf32> to vector<8x128xbf16>
      %c0_14 = arith.constant 0 : index
      %c0_15 = arith.constant 0 : index
      %17 = vector.load %arg6[%c0_14, %c0_15] : memref<8x128xbf16, #tpu.memory_space<vmem>>, vector<8x128xbf16>
      tpu.vector_store %arg6[%c0_14, %c0_15], %16 {strides = array<i32>} : memref<8x128xbf16, #tpu.memory_space<vmem>>, vector<8x128xbf16>,
    } else {
    }
    return
  }
  func.func @transform_0(%arg0: i32, %arg1: i32, %arg2: i32) -> (i32, i32) {
    %c0_i32 = arith.constant 0 : i32
    return %arg0, %arg2 : i32, i32
  }
  func.func @transform_1(%arg0: i32, %arg1: i32, %arg2: i32) -> (i32, i32) {
    %c0_i32 = arith.constant 0 : i32
    return %arg2, %arg1 : i32, i32
  }
  func.func @transform_2(%arg0: i32, %arg1: i32, %arg2: i32) -> (i32, i32) {
    %c0_i32 = arith.constant 0 : i32
    %c0_i32_0 = arith.constant 0 : i32
    return %c0_i32, %arg1 : i32, i32
  }
  func.func @transform_3(%arg0: i32, %arg1: i32, %arg2: i32) -> (i32, i32) {
    %c0_i32 = arith.constant 0 : i32
    return %arg0, %arg1 : i32, i32
  }
}

module attributes {stable_mosaic.version = 11 : i64} {
  func.func @_ln_matmul_kernel(%arg0: i32, %arg1: memref<16x32xbf16, #tpu.memory_space<vmem>>, %arg2: memref<1x32xf32, #tpu.memory_space<vmem>>, %arg3: memref<1x32xf32, #tpu.memory_space<vmem>>, %arg4: memref<32x128xbf16, #tpu.memory_space<vmem>>, %arg5: memref<1x128xf32, #tpu.memory_space<vmem>>, %arg6: memref<16x128xbf16, #tpu.memory_space<vmem>>) attributes {dimension_semantics = [#tpu.dimension_semantics<parallel>], iteration_bounds = array<i64: 1>, scalar_prefetch = 0 : i64, scratch_operands = 0 : i64, tpu.core_type = #tpu.core_type<tc>, window_params = [{transform_indices = @transform_0, window_bounds = array<i64: 16, 32>}, {pipeline_mode = #tpu.pipeline_mode<synchronous>, transform_indices = @transform_1, window_bounds = array<i64: 1, 32>}, {pipeline_mode = #tpu.pipeline_mode<synchronous>, transform_indices = @transform_2, window_bounds = array<i64: 1, 32>}, {pipeline_mode = #tpu.pipeline_mode<synchronous>, transform_indices = @transform_3, window_bounds = array<i64: 32, 128>}, {pipeline_mode = #tpu.pipeline_mode<synchronous>, transform_indices = @transform_4, window_bounds = array<i64: 1, 128>}, {transform_indices = @transform_5, window_bounds = array<i64: 16, 128>}]} {
    %c0 = arith.constant 0 : index
    %c0_0 = arith.constant 0 : index
    %0 = vector.load %arg1[%c0, %c0_0] : memref<16x32xbf16, #tpu.memory_space<vmem>>, vector<16x32xbf16>
    %1 = arith.extf %0 : vector<16x32xbf16> to vector<16x32xf32>
    %cst = arith.constant dense<0.000000e+00> : vector<16xf32>
    %2 = vector.multi_reduction <add>, %1, %cst [1] : vector<16x32xf32> to vector<16xf32>
    %3 = vector.shape_cast %2 : vector<16xf32> to vector<16x1xf32>
    %cst_1 = arith.constant 3.200000e+01 : f32
    %4 = vector.broadcast %cst_1 : f32 to vector<16x1xf32>
    %5 = arith.divf %3, %4 : vector<16x1xf32>
    %6 = vector.broadcast %5 : vector<16x1xf32> to vector<16x32xf32>
    %7 = arith.subf %1, %6 : vector<16x32xf32>
    %8 = arith.mulf %7, %7 : vector<16x32xf32>
    %cst_2 = arith.constant dense<0.000000e+00> : vector<16xf32>
    %9 = vector.multi_reduction <add>, %8, %cst_2 [1] : vector<16x32xf32> to vector<16xf32>
    %10 = vector.shape_cast %9 : vector<16xf32> to vector<16x1xf32>
    %cst_3 = arith.constant 3.200000e+01 : f32
    %11 = vector.broadcast %cst_3 : f32 to vector<16x1xf32>
    %12 = arith.divf %10, %11 : vector<16x1xf32>
    %13 = vector.broadcast %5 : vector<16x1xf32> to vector<16x32xf32>
    %14 = arith.subf %1, %13 : vector<16x32xf32>
    %cst_4 = arith.constant 9.99999997E-7 : f32
    %15 = vector.broadcast %cst_4 : f32 to vector<16x1xf32>
    %16 = arith.addf %12, %15 : vector<16x1xf32>
    %17 = math.rsqrt %16 : vector<16x1xf32>
    %18 = vector.broadcast %17 : vector<16x1xf32> to vector<16x32xf32>
    %19 = arith.mulf %14, %18 : vector<16x32xf32>
    %c0_5 = arith.constant 0 : index
    %c0_6 = arith.constant 0 : index
    %20 = vector.load %arg2[%c0_5, %c0_6] : memref<1x32xf32, #tpu.memory_space<vmem>>, vector<1x32xf32>
    %21 = vector.broadcast %20 : vector<1x32xf32> to vector<16x32xf32>
    %22 = arith.mulf %19, %21 : vector<16x32xf32>
    %c0_7 = arith.constant 0 : index
    %c0_8 = arith.constant 0 : index
    %23 = vector.load %arg3[%c0_7, %c0_8] : memref<1x32xf32, #tpu.memory_space<vmem>>, vector<1x32xf32>
    %24 = vector.broadcast %23 : vector<1x32xf32> to vector<16x32xf32>
    %25 = arith.addf %22, %24 : vector<16x32xf32>
    %26 = arith.truncf %25 : vector<16x32xf32> to vector<16x32xbf16>
    %c0_9 = arith.constant 0 : index
    %c0_10 = arith.constant 0 : index
    %27 = vector.load %arg4[%c0_9, %c0_10] : memref<32x128xbf16, #tpu.memory_space<vmem>>, vector<32x128xbf16>
    %cst_11 = arith.constant dense<0.000000e+00> : vector<16x128xf32>
    %28 = tpu.matmul %26, %27, %cst_11 {dimension_numbers = #tpu.dot_dimension_numbers<[1], [0], [0], [1], [0, 0, 1, 1], [], []>} : vector<16x32xbf16>, vector<32x128xbf16>, vector<16x128xf32> -> vector<16x128xf32>
    %c0_12 = arith.constant 0 : index
    %c0_13 = arith.constant 0 : index
    %29 = vector.load %arg5[%c0_12, %c0_13] : memref<1x128xf32, #tpu.memory_space<vmem>>, vector<1x128xf32>
    %30 = vector.broadcast %29 : vector<1x128xf32> to vector<16x128xf32>
    %31 = arith.addf %28, %30 : vector<16x128xf32>
    %32 = arith.truncf %31 : vector<16x128xf32> to vector<16x128xbf16>
    %c0_14 = arith.constant 0 : index
    %c0_15 = arith.constant 0 : index
    %33 = vector.load %arg6[%c0_14, %c0_15] : memref<16x128xbf16, #tpu.memory_space<vmem>>, vector<16x128xbf16>
    tpu.vector_store %arg6[%c0_14, %c0_15], %32 {strides = array<i32>} : memref<16x128xbf16, #tpu.memory_space<vmem>>, vector<16x128xbf16>,
    return
  }
  func.func @transform_0(%arg0: i32) -> (i32, i32) {
    %c0_i32 = arith.constant 0 : i32
    %c0_i32_0 = arith.constant 0 : i32
    return %arg0, %c0_i32 : i32, i32
  }
  func.func @transform_1(%arg0: i32) -> (i32, i32) {
    %c0_i32 = arith.constant 0 : i32
    %c0_i32_0 = arith.constant 0 : i32
    %c0_i32_1 = arith.constant 0 : i32
    return %c0_i32, %c0_i32_0 : i32, i32
  }
  func.func @transform_2(%arg0: i32) -> (i32, i32) {
    %c0_i32 = arith.constant 0 : i32
    %c0_i32_0 = arith.constant 0 : i32
    %c0_i32_1 = arith.constant 0 : i32
    return %c0_i32, %c0_i32_0 : i32, i32
  }
  func.func @transform_3(%arg0: i32) -> (i32, i32) {
    %c0_i32 = arith.constant 0 : i32
    %c0_i32_0 = arith.constant 0 : i32
    %c0_i32_1 = arith.constant 0 : i32
    return %c0_i32, %c0_i32_0 : i32, i32
  }
  func.func @transform_4(%arg0: i32) -> (i32, i32) {
    %c0_i32 = arith.constant 0 : i32
    %c0_i32_0 = arith.constant 0 : i32
    %c0_i32_1 = arith.constant 0 : i32
    return %c0_i32, %c0_i32_0 : i32, i32
  }
  func.func @transform_5(%arg0: i32) -> (i32, i32) {
    %c0_i32 = arith.constant 0 : i32
    %c0_i32_0 = arith.constant 0 : i32
    return %arg0, %c0_i32 : i32, i32
  }
}

module attributes {stable_mosaic.version = 11 : i64} {
  func.func @_flash_attn_kernel(%arg0: i32, %arg1: i32, %arg2: i32, %arg3: i32, %arg4: memref<1x1x8x16xbf16, #tpu.memory_space<vmem>>, %arg5: memref<1x1x8x16xbf16, #tpu.memory_space<vmem>>, %arg6: memref<1x1x8x16xbf16, #tpu.memory_space<vmem>>, %arg7: memref<1x1x8x16xbf16, #tpu.memory_space<vmem>>, %arg8: memref<8x1xf32, #tpu.memory_space<vmem>>, %arg9: memref<8x1xf32, #tpu.memory_space<vmem>>, %arg10: memref<8x16xf32, #tpu.memory_space<vmem>>) attributes {dimension_semantics = [#tpu.dimension_semantics<parallel>, #tpu.dimension_semantics<parallel>, #tpu.dimension_semantics<parallel>, #tpu.dimension_semantics<arbitrary>], iteration_bounds = array<i64: 2, 2, 1, 1>, scalar_prefetch = 0 : i64, scratch_operands = 3 : i64, tpu.core_type = #tpu.core_type<tc>, window_params = [{transform_indices = @transform_0, window_bounds = array<i64: 1, 1, 8, 16>}, {transform_indices = @transform_1, window_bounds = array<i64: 1, 1, 8, 16>}, {transform_indices = @transform_2, window_bounds = array<i64: 1, 1, 8, 16>}, {transform_indices = @transform_3, window_bounds = array<i64: 1, 1, 8, 16>}]} {
    %c0_i32 = arith.constant 0 : i32
    %0 = arith.cmpi eq, %arg3, %c0_i32 : i32
    %1 = arith.extui %0 : i1 to i32
    %c0_i32_0 = arith.constant 0 : i32
    %2 = arith.cmpi ne, %1, %c0_i32_0 : i32
    scf.if %2 {
      %cst_32 = arith.constant -1.000000e+30 : f32
      %48 = vector.broadcast %cst_32 : f32 to vector<8x1xf32>
      %c0_33 = arith.constant 0 : index
      %c0_34 = arith.constant 0 : index
      %49 = vector.load %arg8[%c0_33, %c0_34] : memref<8x1xf32, #tpu.memory_space<vmem>>, vector<8x1xf32>
      tpu.vector_store %arg8[%c0_33, %c0_34], %48 {strides = array<i32>} : memref<8x1xf32, #tpu.memory_space<vmem>>, vector<8x1xf32>,
      %cst_35 = arith.constant 0.000000e+00 : f32
      %50 = vector.broadcast %cst_35 : f32 to vector<8x1xf32>
      %c0_36 = arith.constant 0 : index
      %c0_37 = arith.constant 0 : index
      %51 = vector.load %arg9[%c0_36, %c0_37] : memref<8x1xf32, #tpu.memory_space<vmem>>, vector<8x1xf32>
      tpu.vector_store %arg9[%c0_36, %c0_37], %50 {strides = array<i32>} : memref<8x1xf32, #tpu.memory_space<vmem>>, vector<8x1xf32>,
      %cst_38 = arith.constant 0.000000e+00 : f32
      %52 = vector.broadcast %cst_38 : f32 to vector<8x16xf32>
      %c0_39 = arith.constant 0 : index
      %c0_40 = arith.constant 0 : index
      %53 = vector.load %arg10[%c0_39, %c0_40] : memref<8x16xf32, #tpu.memory_space<vmem>>, vector<8x16xf32>
      tpu.vector_store %arg10[%c0_39, %c0_40], %52 {strides = array<i32>} : memref<8x16xf32, #tpu.memory_space<vmem>>, vector<8x16xf32>,
    } else {
    }
    %c0 = arith.constant 0 : index
    %c0_1 = arith.constant 0 : index
    %c0_2 = arith.constant 0 : index
    %c0_3 = arith.constant 0 : index
    %3 = vector.load %arg4[%c0, %c0_1, %c0_2, %c0_3] : memref<1x1x8x16xbf16, #tpu.memory_space<vmem>>, vector<1x1x8x16xbf16>
    %4 = vector.shape_cast %3 : vector<1x1x8x16xbf16> to vector<8x16xbf16>
    %c0_4 = arith.constant 0 : index
    %c0_5 = arith.constant 0 : index
    %c0_6 = arith.constant 0 : index
    %c0_7 = arith.constant 0 : index
    %5 = vector.load %arg5[%c0_4, %c0_5, %c0_6, %c0_7] : memref<1x1x8x16xbf16, #tpu.memory_space<vmem>>, vector<1x1x8x16xbf16>
    %6 = vector.shape_cast %5 : vector<1x1x8x16xbf16> to vector<8x16xbf16>
    %c0_8 = arith.constant 0 : index
    %c0_9 = arith.constant 0 : index
    %c0_10 = arith.constant 0 : index
    %c0_11 = arith.constant 0 : index
    %7 = vector.load %arg6[%c0_8, %c0_9, %c0_10, %c0_11] : memref<1x1x8x16xbf16, #tpu.memory_space<vmem>>, vector<1x1x8x16xbf16>
    %8 = vector.shape_cast %7 : vector<1x1x8x16xbf16> to vector<8x16xbf16>
    %cst = arith.constant dense<0.000000e+00> : vector<8x8xf32>
    %9 = tpu.matmul %4, %6, %cst {dimension_numbers = #tpu.dot_dimension_numbers<[1], [1], [0], [0], [0, 0, 1, 0], [], []>} : vector<8x16xbf16>, vector<8x16xbf16>, vector<8x8xf32> -> vector<8x8xf32>
    %cst_12 = arith.constant 2.500000e-01 : f32
    %10 = vector.broadcast %cst_12 : f32 to vector<8x8xf32>
    %11 = arith.mulf %9, %10 : vector<8x8xf32>
    %c8_i32 = arith.constant 8 : i32
    %12 = arith.muli %arg3, %c8_i32 : i32
    %13 = tpu.iota {dimensions = array<i32: 1>} : vector<8x8xi32>
    %14 = vector.broadcast %12 : i32 to vector<8x8xi32>
    %15 = arith.addi %14, %13 : vector<8x8xi32>
    %c5_i32 = arith.constant 5 : i32
    %16 = vector.broadcast %c5_i32 : i32 to vector<8x8xi32>
    %17 = arith.cmpi slt, %15, %16 : vector<8x8xi32>
    %cst_13 = arith.constant -1.000000e+30 : f32
    %18 = vector.broadcast %cst_13 : f32 to vector<8x8xf32>
    %19 = arith.select %17, %11, %18 : vector<8x8xi1>, vector<8x8xf32>
    %c0_14 = arith.constant 0 : index
    %c0_15 = arith.constant 0 : index
    %20 = vector.load %arg8[%c0_14, %c0_15] : memref<8x1xf32, #tpu.memory_space<vmem>>, vector<8x1xf32>
    %cst_16 = arith.constant dense<0xFF800000> : vector<8xf32>
    %21 = vector.multi_reduction <maximumf>, %19, %cst_16 [1] : vector<8x8xf32> to vector<8xf32>
    %22 = vector.shape_cast %21 : vector<8xf32> to vector<8x1xf32>
    %23 = arith.maximumf %20, %22 : vector<8x1xf32>
    %24 = arith.subf %20, %23 : vector<8x1xf32>
    %25 = math.exp %24 : vector<8x1xf32>
    %26 = vector.broadcast %23 : vector<8x1xf32> to vector<8x8xf32>
    %27 = arith.subf %19, %26 : vector<8x8xf32>
    %28 = math.exp %27 : vector<8x8xf32>
    %cst_17 = arith.constant 0.000000e+00 : f32
    %29 = vector.broadcast %cst_17 : f32 to vector<8x8xf32>
    %30 = arith.select %17, %28, %29 : vector<8x8xi1>, vector<8x8xf32>
    %c0_18 = arith.constant 0 : index
    %c0_19 = arith.constant 0 : index
    %31 = vector.load %arg9[%c0_18, %c0_19] : memref<8x1xf32, #tpu.memory_space<vmem>>, vector<8x1xf32>
    %32 = arith.mulf %25, %31 : vector<8x1xf32>
    %cst_20 = arith.constant dense<0.000000e+00> : vector<8xf32>
    %33 = vector.multi_reduction <add>, %30, %cst_20 [1] : vector<8x8xf32> to vector<8xf32>
    %34 = vector.shape_cast %33 : vector<8xf32> to vector<8x1xf32>
    %35 = arith.addf %32, %34 : vector<8x1xf32>
    %c0_21 = arith.constant 0 : index
    %c0_22 = arith.constant 0 : index
    %36 = vector.load %arg9[%c0_21, %c0_22] : memref<8x1xf32, #tpu.memory_space<vmem>>, vector<8x1xf32>
    tpu.vector_store %arg9[%c0_21, %c0_22], %35 {strides = array<i32>} : memref<8x1xf32, #tpu.memory_space<vmem>>, vector<8x1xf32>,
    %c0_23 = arith.constant 0 : index
    %c0_24 = arith.constant 0 : index
    %37 = vector.load %arg10[%c0_23, %c0_24] : memref<8x16xf32, #tpu.memory_space<vmem>>, vector<8x16xf32>
    %38 = vector.broadcast %25 : vector<8x1xf32> to vector<8x16xf32>
    %39 = arith.mulf %38, %37 : vector<8x16xf32>
    %40 = arith.truncf %30 : vector<8x8xf32> to vector<8x8xbf16>
    %cst_25 = arith.constant dense<0.000000e+00> : vector<8x16xf32>
    %41 = tpu.matmul %40, %8, %cst_25 {dimension_numbers = #tpu.dot_dimension_numbers<[1], [0], [0], [1], [0, 0, 1, 1], [], []>} : vector<8x8xbf16>, vector<8x16xbf16>, vector<8x16xf32> -> vector<8x16xf32>
    %42 = arith.addf %39, %41 : vector<8x16xf32>
    %c0_26 = arith.constant 0 : index
    %c0_27 = arith.constant 0 : index
    %43 = vector.load %arg10[%c0_26, %c0_27] : memref<8x16xf32, #tpu.memory_space<vmem>>, vector<8x16xf32>
    tpu.vector_store %arg10[%c0_26, %c0_27], %42 {strides = array<i32>} : memref<8x16xf32, #tpu.memory_space<vmem>>, vector<8x16xf32>,
    %c0_28 = arith.constant 0 : index
    %c0_29 = arith.constant 0 : index
    %44 = vector.load %arg8[%c0_28, %c0_29] : memref<8x1xf32, #tpu.memory_space<vmem>>, vector<8x1xf32>
    tpu.vector_store %arg8[%c0_28, %c0_29], %23 {strides = array<i32>} : memref<8x1xf32, #tpu.memory_space<vmem>>, vector<8x1xf32>,
    %c0_i32_30 = arith.constant 0 : i32
    %45 = arith.cmpi eq, %arg3, %c0_i32_30 : i32
    %46 = arith.extui %45 : i1 to i32
    %c0_i32_31 = arith.constant 0 : i32
    %47 = arith.cmpi ne, %46, %c0_i32_31 : i32
    scf.if %47 {
      %c0_32 = arith.constant 0 : index
      %c0_33 = arith.constant 0 : index
      %48 = vector.load %arg10[%c0_32, %c0_33] : memref<8x16xf32, #tpu.memory_space<vmem>>, vector<8x16xf32>
      %c0_34 = arith.constant 0 : index
      %c0_35 = arith.constant 0 : index
      %49 = vector.load %arg9[%c0_34, %c0_35] : memref<8x1xf32, #tpu.memory_space<vmem>>, vector<8x1xf32>
      %50 = vector.broadcast %49 : vector<8x1xf32> to vector<8x16xf32>
      %51 = arith.divf %48, %50 : vector<8x16xf32>
      %52 = arith.truncf %51 : vector<8x16xf32> to vector<8x16xbf16>
      %c0_36 = arith.constant 0 : index
      %c0_37 = arith.constant 0 : index
      %c0_38 = arith.constant 0 : index
      %c0_39 = arith.constant 0 : index
      %53 = vector.load %arg7[%c0_36, %c0_37, %c0_38, %c0_39] : memref<1x1x8x16xbf16, #tpu.memory_space<vmem>>, vector<1x1x8x16xbf16>
      %54 = vector.shape_cast %53 : vector<1x1x8x16xbf16> to vector<8x16xbf16>
      %55 = vector.shape_cast %52 : vector<8x16xbf16> to vector<1x1x8x16xbf16>
      tpu.vector_store %arg7[%c0_36, %c0_37, %c0_38, %c0_39], %55 {strides = array<i32>} : memref<1x1x8x16xbf16, #tpu.memory_space<vmem>>, vector<1x1x8x16xbf16>,
    } else {
    }
    return
  }
  func.func @transform_0(%arg0: i32, %arg1: i32, %arg2: i32, %arg3: i32) -> (i32, i32, i32, i32) {
    %c0_i32 = arith.constant 0 : i32
    %c0_i32_0 = arith.constant 0 : i32
    return %arg0, %arg1, %arg2, %c0_i32 : i32, i32, i32, i32
  }
  func.func @transform_1(%arg0: i32, %arg1: i32, %arg2: i32, %arg3: i32) -> (i32, i32, i32, i32) {
    %c0_i32 = arith.constant 0 : i32
    %c0_i32_0 = arith.constant 0 : i32
    return %arg0, %arg1, %arg3, %c0_i32 : i32, i32, i32, i32
  }
  func.func @transform_2(%arg0: i32, %arg1: i32, %arg2: i32, %arg3: i32) -> (i32, i32, i32, i32) {
    %c0_i32 = arith.constant 0 : i32
    %c0_i32_0 = arith.constant 0 : i32
    return %arg0, %arg1, %arg3, %c0_i32 : i32, i32, i32, i32
  }
  func.func @transform_3(%arg0: i32, %arg1: i32, %arg2: i32, %arg3: i32) -> (i32, i32, i32, i32) {
    %c0_i32 = arith.constant 0 : i32
    %c0_i32_0 = arith.constant 0 : i32
    return %arg0, %arg1, %arg2, %c0_i32 : i32, i32, i32, i32
  }
}

module attributes {stable_mosaic.version = 11 : i64} {
  func.func @_matmul_kernel(%arg0: i32, %arg1: i32, %arg2: i32, %arg3: memref<16x128xbf16, #tpu.memory_space<vmem>>, %arg4: memref<128x128xbf16, #tpu.memory_space<vmem>>, %arg5: memref<1x128xf32, #tpu.memory_space<vmem>>, %arg6: memref<16x128xbf16, #tpu.memory_space<vmem>>, %arg7: memref<16x128xbf16, #tpu.memory_space<vmem>>, %arg8: memref<16x128xf32, #tpu.memory_space<vmem>>) attributes {dimension_semantics = [#tpu.dimension_semantics<parallel>, #tpu.dimension_semantics<parallel>, #tpu.dimension_semantics<arbitrary>], iteration_bounds = array<i64: 1, 1, 1>, scalar_prefetch = 0 : i64, scratch_operands = 1 : i64, tpu.core_type = #tpu.core_type<tc>, window_params = [{transform_indices = @transform_0, window_bounds = array<i64: 16, 128>}, {transform_indices = @transform_1, window_bounds = array<i64: 128, 128>}, {transform_indices = @transform_2, window_bounds = array<i64: 1, 128>}, {transform_indices = @transform_3, window_bounds = array<i64: 16, 128>}, {transform_indices = @transform_4, window_bounds = array<i64: 16, 128>}]} {
    %c0_i32 = arith.constant 0 : i32
    %0 = arith.cmpi eq, %arg2, %c0_i32 : i32
    %1 = arith.extui %0 : i1 to i32
    %c0_i32_0 = arith.constant 0 : i32
    %2 = arith.cmpi ne, %1, %c0_i32_0 : i32
    scf.if %2 {
      %cst_10 = arith.constant 0.000000e+00 : f32
      %12 = vector.broadcast %cst_10 : f32 to vector<16x128xf32>
      %c0_11 = arith.constant 0 : index
      %c0_12 = arith.constant 0 : index
      %13 = vector.load %arg8[%c0_11, %c0_12] : memref<16x128xf32, #tpu.memory_space<vmem>>, vector<16x128xf32>
      tpu.vector_store %arg8[%c0_11, %c0_12], %12 {strides = array<i32>} : memref<16x128xf32, #tpu.memory_space<vmem>>, vector<16x128xf32>,
    } else {
    }
    %c0 = arith.constant 0 : index
    %c0_1 = arith.constant 0 : index
    %3 = vector.load %arg8[%c0, %c0_1] : memref<16x128xf32, #tpu.memory_space<vmem>>, vector<16x128xf32>
    %c0_2 = arith.constant 0 : index
    %c0_3 = arith.constant 0 : index
    %4 = vector.load %arg3[%c0_2, %c0_3] : memref<16x128xbf16, #tpu.memory_space<vmem>>, vector<16x128xbf16>
    %c0_4 = arith.constant 0 : index
    %c0_5 = arith.constant 0 : index
    %5 = vector.load %arg4[%c0_4, %c0_5] : memref<128x128xbf16, #tpu.memory_space<vmem>>, vector<128x128xbf16>
    %cst = arith.constant dense<0.000000e+00> : vector<16x128xf32>
    %6 = tpu.matmul %4, %5, %cst {dimension_numbers = #tpu.dot_dimension_numbers<[1], [0], [0], [1], [0, 0, 1, 1], [], []>} : vector<16x128xbf16>, vector<128x128xbf16>, vector<16x128xf32> -> vector<16x128xf32>
    %7 = arith.addf %3, %6 : vector<16x128xf32>
    %c0_6 = arith.constant 0 : index
    %c0_7 = arith.constant 0 : index
    %8 = vector.load %arg8[%c0_6, %c0_7] : memref<16x128xf32, #tpu.memory_space<vmem>>, vector<16x128xf32>
    tpu.vector_store %arg8[%c0_6, %c0_7], %7 {strides = array<i32>} : memref<16x128xf32, #tpu.memory_space<vmem>>, vector<16x128xf32>,
    %c0_i32_8 = arith.constant 0 : i32
    %9 = arith.cmpi eq, %arg2, %c0_i32_8 : i32
    %10 = arith.extui %9 : i1 to i32
    %c0_i32_9 = arith.constant 0 : i32
    %11 = arith.cmpi ne, %10, %c0_i32_9 : i32
    scf.if %11 {
      %c0_10 = arith.constant 0 : index
      %c0_11 = arith.constant 0 : index
      %12 = vector.load %arg8[%c0_10, %c0_11] : memref<16x128xf32, #tpu.memory_space<vmem>>, vector<16x128xf32>
      %c0_12 = arith.constant 0 : index
      %c0_13 = arith.constant 0 : index
      %13 = vector.load %arg5[%c0_12, %c0_13] : memref<1x128xf32, #tpu.memory_space<vmem>>, vector<1x128xf32>
      %14 = vector.broadcast %13 : vector<1x128xf32> to vector<16x128xf32>
      %15 = arith.addf %12, %14 : vector<16x128xf32>
      %c0_14 = arith.constant 0 : index
      %c0_15 = arith.constant 0 : index
      %16 = vector.load %arg6[%c0_14, %c0_15] : memref<16x128xbf16, #tpu.memory_space<vmem>>, vector<16x128xbf16>
      %17 = arith.extf %16 : vector<16x128xbf16> to vector<16x128xf32>
      %18 = arith.addf %15, %17 : vector<16x128xf32>
      %19 = arith.truncf %18 : vector<16x128xf32> to vector<16x128xbf16>
      %c0_16 = arith.constant 0 : index
      %c0_17 = arith.constant 0 : index
      %20 = vector.load %arg7[%c0_16, %c0_17] : memref<16x128xbf16, #tpu.memory_space<vmem>>, vector<16x128xbf16>
      tpu.vector_store %arg7[%c0_16, %c0_17], %19 {strides = array<i32>} : memref<16x128xbf16, #tpu.memory_space<vmem>>, vector<16x128xbf16>,
    } else {
    }
    return
  }
  func.func @transform_0(%arg0: i32, %arg1: i32, %arg2: i32) -> (i32, i32) {
    %c0_i32 = arith.constant 0 : i32
    return %arg0, %arg2 : i32, i32
  }
  func.func @transform_1(%arg0: i32, %arg1: i32, %arg2: i32) -> (i32, i32) {
    %c0_i32 = arith.constant 0 : i32
    return %arg2, %arg1 : i32, i32
  }
  func.func @transform_2(%arg0: i32, %arg1: i32, %arg2: i32) -> (i32, i32) {
    %c0_i32 = arith.constant 0 : i32
    %c0_i32_0 = arith.constant 0 : i32
    return %c0_i32, %arg1 : i32, i32
  }
  func.func @transform_3(%arg0: i32, %arg1: i32, %arg2: i32) -> (i32, i32) {
    %c0_i32 = arith.constant 0 : i32
    return %arg0, %arg1 : i32, i32
  }
  func.func @transform_4(%arg0: i32, %arg1: i32, %arg2: i32) -> (i32, i32) {
    %c0_i32 = arith.constant 0 : i32
    return %arg0, %arg1 : i32, i32
  }
}

module attributes {stable_mosaic.version = 11 : i64} {
  func.func @_mlp_kernel(%arg0: i32, %arg1: memref<16x32xbf16, #tpu.memory_space<vmem>>, %arg2: memref<1x32xf32, #tpu.memory_space<vmem>>, %arg3: memref<1x32xf32, #tpu.memory_space<vmem>>, %arg4: memref<32x128xbf16, #tpu.memory_space<vmem>>, %arg5: memref<1x128xf32, #tpu.memory_space<vmem>>, %arg6: memref<128x32xbf16, #tpu.memory_space<vmem>>, %arg7: memref<1x32xf32, #tpu.memory_space<vmem>>, %arg8: memref<16x32xbf16, #tpu.memory_space<vmem>>) attributes {dimension_semantics = [#tpu.dimension_semantics<parallel>], iteration_bounds = array<i64: 1>, scalar_prefetch = 0 : i64, scratch_operands = 0 : i64, tpu.core_type = #tpu.core_type<tc>, window_params = [{transform_indices = @transform_0, window_bounds = array<i64: 16, 32>}, {pipeline_mode = #tpu.pipeline_mode<synchronous>, transform_indices = @transform_1, window_bounds = array<i64: 1, 32>}, {pipeline_mode = #tpu.pipeline_mode<synchronous>, transform_indices = @transform_2, window_bounds = array<i64: 1, 32>}, {pipeline_mode = #tpu.pipeline_mode<synchronous>, transform_indices = @transform_3, window_bounds = array<i64: 32, 128>}, {pipeline_mode = #tpu.pipeline_mode<synchronous>, transform_indices = @transform_4, window_bounds = array<i64: 1, 128>}, {pipeline_mode = #tpu.pipeline_mode<synchronous>, transform_indices = @transform_5, window_bounds = array<i64: 128, 32>}, {pipeline_mode = #tpu.pipeline_mode<synchronous>, transform_indices = @transform_6, window_bounds = array<i64: 1, 32>}, {transform_indices = @transform_7, window_bounds = array<i64: 16, 32>}]} {
    %c0 = arith.constant 0 : index
    %c0_0 = arith.constant 0 : index
    %0 = vector.load %arg1[%c0, %c0_0] : memref<16x32xbf16, #tpu.memory_space<vmem>>, vector<16x32xbf16>
    %1 = arith.extf %0 : vector<16x32xbf16> to vector<16x32xf32>
    %cst = arith.constant dense<0.000000e+00> : vector<16xf32>
    %2 = vector.multi_reduction <add>, %1, %cst [1] : vector<16x32xf32> to vector<16xf32>
    %3 = vector.shape_cast %2 : vector<16xf32> to vector<16x1xf32>
    %cst_1 = arith.constant 3.200000e+01 : f32
    %4 = vector.broadcast %cst_1 : f32 to vector<16x1xf32>
    %5 = arith.divf %3, %4 : vector<16x1xf32>
    %6 = vector.broadcast %5 : vector<16x1xf32> to vector<16x32xf32>
    %7 = arith.subf %1, %6 : vector<16x32xf32>
    %8 = arith.mulf %7, %7 : vector<16x32xf32>
    %cst_2 = arith.constant dense<0.000000e+00> : vector<16xf32>
    %9 = vector.multi_reduction <add>, %8, %cst_2 [1] : vector<16x32xf32> to vector<16xf32>
    %10 = vector.shape_cast %9 : vector<16xf32> to vector<16x1xf32>
    %cst_3 = arith.constant 3.200000e+01 : f32
    %11 = vector.broadcast %cst_3 : f32 to vector<16x1xf32>
    %12 = arith.divf %10, %11 : vector<16x1xf32>
    %13 = vector.broadcast %5 : vector<16x1xf32> to vector<16x32xf32>
    %14 = arith.subf %1, %13 : vector<16x32xf32>
    %cst_4 = arith.constant 9.99999997E-7 : f32
    %15 = vector.broadcast %cst_4 : f32 to vector<16x1xf32>
    %16 = arith.addf %12, %15 : vector<16x1xf32>
    %17 = math.rsqrt %16 : vector<16x1xf32>
    %18 = vector.broadcast %17 : vector<16x1xf32> to vector<16x32xf32>
    %19 = arith.mulf %14, %18 : vector<16x32xf32>
    %c0_5 = arith.constant 0 : index
    %c0_6 = arith.constant 0 : index
    %20 = vector.load %arg2[%c0_5, %c0_6] : memref<1x32xf32, #tpu.memory_space<vmem>>, vector<1x32xf32>
    %21 = vector.broadcast %20 : vector<1x32xf32> to vector<16x32xf32>
    %22 = arith.mulf %19, %21 : vector<16x32xf32>
    %c0_7 = arith.constant 0 : index
    %c0_8 = arith.constant 0 : index
    %23 = vector.load %arg3[%c0_7, %c0_8] : memref<1x32xf32, #tpu.memory_space<vmem>>, vector<1x32xf32>
    %24 = vector.broadcast %23 : vector<1x32xf32> to vector<16x32xf32>
    %25 = arith.addf %22, %24 : vector<16x32xf32>
    %26 = arith.truncf %25 : vector<16x32xf32> to vector<16x32xbf16>
    %c0_9 = arith.constant 0 : index
    %c0_10 = arith.constant 0 : index
    %27 = vector.load %arg4[%c0_9, %c0_10] : memref<32x128xbf16, #tpu.memory_space<vmem>>, vector<32x128xbf16>
    %cst_11 = arith.constant dense<0.000000e+00> : vector<16x128xf32>
    %28 = tpu.matmul %26, %27, %cst_11 {dimension_numbers = #tpu.dot_dimension_numbers<[1], [0], [0], [1], [0, 0, 1, 1], [], []>} : vector<16x32xbf16>, vector<32x128xbf16>, vector<16x128xf32> -> vector<16x128xf32>
    %c0_12 = arith.constant 0 : index
    %c0_13 = arith.constant 0 : index
    %29 = vector.load %arg5[%c0_12, %c0_13] : memref<1x128xf32, #tpu.memory_space<vmem>>, vector<1x128xf32>
    %30 = vector.broadcast %29 : vector<1x128xf32> to vector<16x128xf32>
    %31 = arith.addf %28, %30 : vector<16x128xf32>
    %32 = arith.mulf %31, %31 : vector<16x128xf32>
    %33 = arith.mulf %31, %32 : vector<16x128xf32>
    %cst_14 = arith.constant 4.471500e-02 : f32
    %34 = vector.broadcast %cst_14 : f32 to vector<16x128xf32>
    %35 = arith.mulf %34, %33 : vector<16x128xf32>
    %36 = arith.addf %31, %35 : vector<16x128xf32>
    %cst_15 = arith.constant 0.797884583 : f32
    %37 = vector.broadcast %cst_15 : f32 to vector<16x128xf32>
    %38 = arith.mulf %37, %36 : vector<16x128xf32>
    %39 = math.tanh %38 : vector<16x128xf32>
    %cst_16 = arith.constant 1.000000e+00 : f32
    %40 = vector.broadcast %cst_16 : f32 to vector<16x128xf32>
    %41 = arith.addf %40, %39 : vector<16x128xf32>
    %cst_17 = arith.constant 5.000000e-01 : f32
    %42 = vector.broadcast %cst_17 : f32 to vector<16x128xf32>
    %43 = arith.mulf %42, %41 : vector<16x128xf32>
    %44 = arith.mulf %31, %43 : vector<16x128xf32>
    %45 = arith.truncf %44 : vector<16x128xf32> to vector<16x128xbf16>
    %c0_18 = arith.constant 0 : index
    %c0_19 = arith.constant 0 : index
    %46 = vector.load %arg6[%c0_18, %c0_19] : memref<128x32xbf16, #tpu.memory_space<vmem>>, vector<128x32xbf16>
    %cst_20 = arith.constant dense<0.000000e+00> : vector<16x32xf32>
    %47 = tpu.matmul %45, %46, %cst_20 {dimension_numbers = #tpu.dot_dimension_numbers<[1], [0], [0], [1], [0, 0, 1, 1], [], []>} : vector<16x128xbf16>, vector<128x32xbf16>, vector<16x32xf32> -> vector<16x32xf32>
    %c0_21 = arith.constant 0 : index
    %c0_22 = arith.constant 0 : index
    %48 = vector.load %arg7[%c0_21, %c0_22] : memref<1x32xf32, #tpu.memory_space<vmem>>, vector<1x32xf32>
    %49 = vector.broadcast %48 : vector<1x32xf32> to vector<16x32xf32>
    %50 = arith.addf %47, %49 : vector<16x32xf32>
    %51 = arith.addf %50, %1 : vector<16x32xf32>
    %52 = arith.truncf %51 : vector<16x32xf32> to vector<16x32xbf16>
    %c0_23 = arith.constant 0 : index
    %c0_24 = arith.constant 0 : index
    %53 = vector.load %arg8[%c0_23, %c0_24] : memref<16x32xbf16, #tpu.memory_space<vmem>>, vector<16x32xbf16>
    tpu.vector_store %arg8[%c0_23, %c0_24], %52 {strides = array<i32>} : memref<16x32xbf16, #tpu.memory_space<vmem>>, vector<16x32xbf16>,
    return
  }
  func.func @transform_0(%arg0: i32) -> (i32, i32) {
    %c0_i32 = arith.constant 0 : i32
    %c0_i32_0 = arith.constant 0 : i32
    return %arg0, %c0_i32 : i32, i32
  }
  func.func @transform_1(%arg0: i32) -> (i32, i32) {
    %c0_i32 = arith.constant 0 : i32
    %c0_i32_0 = arith.constant 0 : i32
    %c0_i32_1 = arith.constant 0 : i32
    return %c0_i32, %c0_i32_0 : i32, i32
  }
  func.func @transform_2(%arg0: i32) -> (i32, i32) {
    %c0_i32 = arith.constant 0 : i32
    %c0_i32_0 = arith.constant 0 : i32
    %c0_i32_1 = arith.constant 0 : i32
    return %c0_i32, %c0_i32_0 : i32, i32
  }
  func.func @transform_3(%arg0: i32) -> (i32, i32) {
    %c0_i32 = arith.constant 0 : i32
    %c0_i32_0 = arith.constant 0 : i32
    %c0_i32_1 = arith.constant 0 : i32
    return %c0_i32, %c0_i32_0 : i32, i32
  }
  func.func @transform_4(%arg0: i32) -> (i32, i32) {
    %c0_i32 = arith.constant 0 : i32
    %c0_i32_0 = arith.constant 0 : i32
    %c0_i32_1 = arith.constant 0 : i32
    return %c0_i32, %c0_i32_0 : i32, i32
  }
  func.func @transform_5(%arg0: i32) -> (i32, i32) {
    %c0_i32 = arith.constant 0 : i32
    %c0_i32_0 = arith.constant 0 : i32
    %c0_i32_1 = arith.constant 0 : i32
    return %c0_i32, %c0_i32_0 : i32, i32
  }
  func.func @transform_6(%arg0: i32) -> (i32, i32) {
    %c0_i32 = arith.constant 0 : i32
    %c0_i32_0 = arith.constant 0 : i32
    %c0_i32_1 = arith.constant 0 : i32
    return %c0_i32, %c0_i32_0 : i32, i32
  }
  func.func @transform_7(%arg0: i32) -> (i32, i32) {
    %c0_i32 = arith.constant 0 : i32
    %c0_i32_0 = arith.constant 0 : i32
    return %arg0, %c0_i32 : i32, i32
  }
}

module attributes {stable_mosaic.version = 11 : i64} {
  func.func @_decoder_kernel(%arg0: i32, %arg1: i32, %arg2: memref<1x8x32xbf16, #tpu.memory_space<vmem>>, %arg3: memref<1x8x32xbf16, #tpu.memory_space<vmem>>, %arg4: memref<1x1x32xf32, #tpu.memory_space<vmem>>, %arg5: memref<1x1x32xf32, #tpu.memory_space<vmem>>, %arg6: memref<32x32xbf16, #tpu.memory_space<vmem>>, %arg7: memref<32x32xbf16, #tpu.memory_space<vmem>>, %arg8: memref<1x32xf32, #tpu.memory_space<vmem>>, %arg9: memref<1x1xf32, #tpu.memory_space<vmem>>, %arg10: memref<1x1x8xf32, #tpu.memory_space<vmem>>) attributes {dimension_semantics = [#tpu.dimension_semantics<parallel>, #tpu.dimension_semantics<parallel>], iteration_bounds = array<i64: 2, 1>, scalar_prefetch = 0 : i64, scratch_operands = 0 : i64, tpu.core_type = #tpu.core_type<tc>, window_params = [{transform_indices = @transform_0, window_bounds = array<i64: 1, 8, 32>}, {transform_indices = @transform_1, window_bounds = array<i64: 1, 8, 32>}, {transform_indices = @transform_2, window_bounds = array<i64: 1, 1, 32>}, {transform_indices = @transform_3, window_bounds = array<i64: 1, 1, 32>}, {pipeline_mode = #tpu.pipeline_mode<synchronous>, transform_indices = @transform_4, window_bounds = array<i64: 32, 32>}, {pipeline_mode = #tpu.pipeline_mode<synchronous>, transform_indices = @transform_5, window_bounds = array<i64: 32, 32>}, {pipeline_mode = #tpu.pipeline_mode<synchronous>, transform_indices = @transform_6, window_bounds = array<i64: 1, 32>}, {pipeline_mode = #tpu.pipeline_mode<synchronous>, transform_indices = @transform_7, window_bounds = array<i64: 1, 1>}, {transform_indices = @transform_8, window_bounds = array<i64: 1, 1, 8>}]} {
    %cst = arith.constant 0.000000e+00 : f32
    %0 = vector.broadcast %cst : f32 to vector<8x32xf32>
    %c0 = arith.constant 0 : index
    %c0_0 = arith.constant 0 : index
    %c0_1 = arith.constant 0 : index
    %1 = vector.load %arg2[%c0, %c0_0, %c0_1] : memref<1x8x32xbf16, #tpu.memory_space<vmem>>, vector<1x8x32xbf16>
    %2 = vector.shape_cast %1 : vector<1x8x32xbf16> to vector<8x32xbf16>
    %c0_2 = arith.constant 0 : index
    %c0_3 = arith.constant 0 : index
    %3 = vector.load %arg6[%c0_2, %c0_3] : memref<32x32xbf16, #tpu.memory_space<vmem>>, vector<32x32xbf16>
    %cst_4 = arith.constant dense<0.000000e+00> : vector<8x32xf32>
    %4 = tpu.matmul %2, %3, %cst_4 {dimension_numbers = #tpu.dot_dimension_numbers<[1], [0], [0], [1], [0, 0, 1, 1], [], []>} : vector<8x32xbf16>, vector<32x32xbf16>, vector<8x32xf32> -> vector<8x32xf32>
    %c0_5 = arith.constant 0 : index
    %c0_6 = arith.constant 0 : index
    %c0_7 = arith.constant 0 : index
    %5 = vector.load %arg4[%c0_5, %c0_6, %c0_7] : memref<1x1x32xf32, #tpu.memory_space<vmem>>, vector<1x1x32xf32>
    %6 = vector.shape_cast %5 : vector<1x1x32xf32> to vector<1x32xf32>
    %7 = vector.broadcast %6 : vector<1x32xf32> to vector<8x32xf32>
    %8 = arith.addf %4, %7 : vector<8x32xf32>
    %9 = arith.mulf %8, %8 : vector<8x32xf32>
    %10 = arith.mulf %8, %9 : vector<8x32xf32>
    %cst_8 = arith.constant 4.471500e-02 : f32
    %11 = vector.broadcast %cst_8 : f32 to vector<8x32xf32>
    %12 = arith.mulf %11, %10 : vector<8x32xf32>
    %13 = arith.addf %8, %12 : vector<8x32xf32>
    %cst_9 = arith.constant 0.797884583 : f32
    %14 = vector.broadcast %cst_9 : f32 to vector<8x32xf32>
    %15 = arith.mulf %14, %13 : vector<8x32xf32>
    %16 = math.tanh %15 : vector<8x32xf32>
    %cst_10 = arith.constant 1.000000e+00 : f32
    %17 = vector.broadcast %cst_10 : f32 to vector<8x32xf32>
    %18 = arith.addf %17, %16 : vector<8x32xf32>
    %cst_11 = arith.constant 5.000000e-01 : f32
    %19 = vector.broadcast %cst_11 : f32 to vector<8x32xf32>
    %20 = arith.mulf %19, %18 : vector<8x32xf32>
    %21 = arith.mulf %8, %20 : vector<8x32xf32>
    %22 = arith.addf %0, %21 : vector<8x32xf32>
    %c0_12 = arith.constant 0 : index
    %c0_13 = arith.constant 0 : index
    %c0_14 = arith.constant 0 : index
    %23 = vector.load %arg3[%c0_12, %c0_13, %c0_14] : memref<1x8x32xbf16, #tpu.memory_space<vmem>>, vector<1x8x32xbf16>
    %24 = vector.shape_cast %23 : vector<1x8x32xbf16> to vector<8x32xbf16>
    %c0_15 = arith.constant 0 : index
    %c0_16 = arith.constant 0 : index
    %25 = vector.load %arg7[%c0_15, %c0_16] : memref<32x32xbf16, #tpu.memory_space<vmem>>, vector<32x32xbf16>
    %cst_17 = arith.constant dense<0.000000e+00> : vector<8x32xf32>
    %26 = tpu.matmul %24, %25, %cst_17 {dimension_numbers = #tpu.dot_dimension_numbers<[1], [0], [0], [1], [0, 0, 1, 1], [], []>} : vector<8x32xbf16>, vector<32x32xbf16>, vector<8x32xf32> -> vector<8x32xf32>
    %c0_18 = arith.constant 0 : index
    %c0_19 = arith.constant 0 : index
    %c0_20 = arith.constant 0 : index
    %27 = vector.load %arg5[%c0_18, %c0_19, %c0_20] : memref<1x1x32xf32, #tpu.memory_space<vmem>>, vector<1x1x32xf32>
    %28 = vector.shape_cast %27 : vector<1x1x32xf32> to vector<1x32xf32>
    %29 = vector.broadcast %28 : vector<1x32xf32> to vector<8x32xf32>
    %30 = arith.addf %26, %29 : vector<8x32xf32>
    %31 = arith.mulf %30, %30 : vector<8x32xf32>
    %32 = arith.mulf %30, %31 : vector<8x32xf32>
    %cst_21 = arith.constant 4.471500e-02 : f32
    %33 = vector.broadcast %cst_21 : f32 to vector<8x32xf32>
    %34 = arith.mulf %33, %32 : vector<8x32xf32>
    %35 = arith.addf %30, %34 : vector<8x32xf32>
    %cst_22 = arith.constant 0.797884583 : f32
    %36 = vector.broadcast %cst_22 : f32 to vector<8x32xf32>
    %37 = arith.mulf %36, %35 : vector<8x32xf32>
    %38 = math.tanh %37 : vector<8x32xf32>
    %cst_23 = arith.constant 1.000000e+00 : f32
    %39 = vector.broadcast %cst_23 : f32 to vector<8x32xf32>
    %40 = arith.addf %39, %38 : vector<8x32xf32>
    %cst_24 = arith.constant 5.000000e-01 : f32
    %41 = vector.broadcast %cst_24 : f32 to vector<8x32xf32>
    %42 = arith.mulf %41, %40 : vector<8x32xf32>
    %43 = arith.mulf %30, %42 : vector<8x32xf32>
    %44 = arith.addf %22, %43 : vector<8x32xf32>
    %c0_25 = arith.constant 0 : index
    %c0_26 = arith.constant 0 : index
    %45 = vector.load %arg8[%c0_25, %c0_26] : memref<1x32xf32, #tpu.memory_space<vmem>>, vector<1x32xf32>
    %cst_27 = arith.constant dense<0.000000e+00> : vector<1x8xf32>
    %46 = tpu.matmul %45, %44, %cst_27 {dimension_numbers = #tpu.dot_dimension_numbers<[1], [1], [0], [0], [0, 0, 1, 0], [], []>} : vector<1x32xf32>, vector<8x32xf32>, vector<1x8xf32> -> vector<1x8xf32>
    %c0_28 = arith.constant 0 : index
    %c0_29 = arith.constant 0 : index
    %47 = vector.load %arg9[%c0_28, %c0_29] : memref<1x1xf32, #tpu.memory_space<vmem>>, vector<1x1xf32>
    %48 = vector.broadcast %47 : vector<1x1xf32> to vector<1x8xf32>
    %49 = arith.addf %46, %48 : vector<1x8xf32>
    %c0_30 = arith.constant 0 : index
    %c0_31 = arith.constant 0 : index
    %c0_32 = arith.constant 0 : index
    %50 = vector.load %arg10[%c0_30, %c0_31, %c0_32] : memref<1x1x8xf32, #tpu.memory_space<vmem>>, vector<1x1x8xf32>
    %51 = vector.shape_cast %50 : vector<1x1x8xf32> to vector<1x8xf32>
    %52 = vector.shape_cast %49 : vector<1x8xf32> to vector<1x1x8xf32>
    tpu.vector_store %arg10[%c0_30, %c0_31, %c0_32], %52 {strides = array<i32>} : memref<1x1x8xf32, #tpu.memory_space<vmem>>, vector<1x1x8xf32>,
    return
  }
  func.func @transform_0(%arg0: i32, %arg1: i32) -> (i32, i32, i32) {
    %c0_i32 = arith.constant 0 : i32
    %c0_i32_0 = arith.constant 0 : i32
    return %arg0, %arg1, %c0_i32 : i32, i32, i32
  }
  func.func @transform_1(%arg0: i32, %arg1: i32) -> (i32, i32, i32) {
    %c0_i32 = arith.constant 0 : i32
    %c0_i32_0 = arith.constant 0 : i32
    return %arg0, %arg1, %c0_i32 : i32, i32, i32
  }
  func.func @transform_2(%arg0: i32, %arg1: i32) -> (i32, i32, i32) {
    %c0_i32 = arith.constant 0 : i32
    %c0_i32_0 = arith.constant 0 : i32
    %c0_i32_1 = arith.constant 0 : i32
    return %arg0, %c0_i32, %c0_i32_0 : i32, i32, i32
  }
  func.func @transform_3(%arg0: i32, %arg1: i32) -> (i32, i32, i32) {
    %c0_i32 = arith.constant 0 : i32
    %c0_i32_0 = arith.constant 0 : i32
    %c0_i32_1 = arith.constant 0 : i32
    return %arg0, %c0_i32, %c0_i32_0 : i32, i32, i32
  }
  func.func @transform_4(%arg0: i32, %arg1: i32) -> (i32, i32) {
    %c0_i32 = arith.constant 0 : i32
    %c0_i32_0 = arith.constant 0 : i32
    %c0_i32_1 = arith.constant 0 : i32
    return %c0_i32, %c0_i32_0 : i32, i32
  }
  func.func @transform_5(%arg0: i32, %arg1: i32) -> (i32, i32) {
    %c0_i32 = arith.constant 0 : i32
    %c0_i32_0 = arith.constant 0 : i32
    %c0_i32_1 = arith.constant 0 : i32
    return %c0_i32, %c0_i32_0 : i32, i32
  }
  func.func @transform_6(%arg0: i32, %arg1: i32) -> (i32, i32) {
    %c0_i32 = arith.constant 0 : i32
    %c0_i32_0 = arith.constant 0 : i32
    %c0_i32_1 = arith.constant 0 : i32
    return %c0_i32, %c0_i32_0 : i32, i32
  }
  func.func @transform_7(%arg0: i32, %arg1: i32) -> (i32, i32) {
    %c0_i32 = arith.constant 0 : i32
    %c0_i32_0 = arith.constant 0 : i32
    %c0_i32_1 = arith.constant 0 : i32
    return %c0_i32, %c0_i32_0 : i32, i32
  }
  func.func @transform_8(%arg0: i32, %arg1: i32) -> (i32, i32, i32) {
    %c0_i32 = arith.constant 0 : i32
    %c0_i32_0 = arith.constant 0 : i32
    return %arg0, %c0_i32, %arg1 : i32, i32, i32
  }
}

module attributes {stable_mosaic.version = 11 : i64} {
  func.func @_relu_resize_kernel(%arg0: i32, %arg1: memref<1x2x2xbf16, #tpu.memory_space<vmem>>, %arg2: memref<28x2xbf16, #tpu.memory_space<vmem>>, %arg3: memref<2x28xbf16, #tpu.memory_space<vmem>>, %arg4: memref<1x28x28xf32, #tpu.memory_space<vmem>>) attributes {dimension_semantics = [#tpu.dimension_semantics<parallel>], iteration_bounds = array<i64: 2>, scalar_prefetch = 0 : i64, scratch_operands = 0 : i64, tpu.core_type = #tpu.core_type<tc>, window_params = [{transform_indices = @transform_0, window_bounds = array<i64: 1, 2, 2>}, {pipeline_mode = #tpu.pipeline_mode<synchronous>, transform_indices = @transform_1, window_bounds = array<i64: 28, 2>}, {pipeline_mode = #tpu.pipeline_mode<synchronous>, transform_indices = @transform_2, window_bounds = array<i64: 2, 28>}, {transform_indices = @transform_3, window_bounds = array<i64: 1, 28, 28>}]} {
    %c0 = arith.constant 0 : index
    %c0_0 = arith.constant 0 : index
    %c0_1 = arith.constant 0 : index
    %0 = vector.load %arg1[%c0, %c0_0, %c0_1] : memref<1x2x2xbf16, #tpu.memory_space<vmem>>, vector<1x2x2xbf16>
    %1 = vector.shape_cast %0 : vector<1x2x2xbf16> to vector<2x2xbf16>
    %cst = arith.constant 0.000000e+00 : bf16
    %2 = vector.broadcast %cst : bf16 to vector<2x2xbf16>
    %3 = arith.maximumf %1, %2 : vector<2x2xbf16>
    %c0_2 = arith.constant 0 : index
    %c0_3 = arith.constant 0 : index
    %4 = vector.load %arg2[%c0_2, %c0_3] : memref<28x2xbf16, #tpu.memory_space<vmem>>, vector<28x2xbf16>
    %cst_4 = arith.constant dense<0.000000e+00> : vector<28x2xf32>
    %5 = tpu.matmul %4, %3, %cst_4 {dimension_numbers = #tpu.dot_dimension_numbers<[1], [0], [0], [1], [0, 0, 1, 1], [], []>} : vector<28x2xbf16>, vector<2x2xbf16>, vector<28x2xf32> -> vector<28x2xf32>
    %6 = arith.truncf %5 : vector<28x2xf32> to vector<28x2xbf16>
    %c0_5 = arith.constant 0 : index
    %c0_6 = arith.constant 0 : index
    %7 = vector.load %arg3[%c0_5, %c0_6] : memref<2x28xbf16, #tpu.memory_space<vmem>>, vector<2x28xbf16>
    %cst_7 = arith.constant dense<0.000000e+00> : vector<28x28xf32>
    %8 = tpu.matmul %6, %7, %cst_7 {dimension_numbers = #tpu.dot_dimension_numbers<[1], [0], [0], [1], [0, 0, 1, 1], [], []>} : vector<28x2xbf16>, vector<2x28xbf16>, vector<28x28xf32> -> vector<28x28xf32>
    %c0_8 = arith.constant 0 : index
    %c0_9 = arith.constant 0 : index
    %c0_10 = arith.constant 0 : index
    %9 = vector.load %arg4[%c0_8, %c0_9, %c0_10] : memref<1x28x28xf32, #tpu.memory_space<vmem>>, vector<1x28x28xf32>
    %10 = vector.shape_cast %9 : vector<1x28x28xf32> to vector<28x28xf32>
    %11 = vector.shape_cast %8 : vector<28x28xf32> to vector<1x28x28xf32>
    tpu.vector_store %arg4[%c0_8, %c0_9, %c0_10], %11 {strides = array<i32>} : memref<1x28x28xf32, #tpu.memory_space<vmem>>, vector<1x28x28xf32>,
    return
  }
  func.func @transform_0(%arg0: i32) -> (i32, i32, i32) {
    %c0_i32 = arith.constant 0 : i32
    %c0_i32_0 = arith.constant 0 : i32
    %c0_i32_1 = arith.constant 0 : i32
    return %arg0, %c0_i32, %c0_i32_0 : i32, i32, i32
  }
  func.func @transform_1(%arg0: i32) -> (i32, i32) {
    %c0_i32 = arith.constant 0 : i32
    %c0_i32_0 = arith.constant 0 : i32
    %c0_i32_1 = arith.constant 0 : i32
    return %c0_i32, %c0_i32_0 : i32, i32
  }
  func.func @transform_2(%arg0: i32) -> (i32, i32) {
    %c0_i32 = arith.constant 0 : i32
    %c0_i32_0 = arith.constant 0 : i32
    %c0_i32_1 = arith.constant 0 : i32
    return %c0_i32, %c0_i32_0 : i32, i32
  }
  func.func @transform_3(%arg0: i32) -> (i32, i32, i32) {
    %c0_i32 = arith.constant 0 : i32
    %c0_i32_0 = arith.constant 0 : i32
    %c0_i32_1 = arith.constant 0 : i32
    return %arg0, %c0_i32, %c0_i32_0 : i32, i32, i32
  }
}

</mosaic_0001>

<bundles_post_ra>
// kernel: depth_anything_forward.12
= control target key start
LH: loop header
LB: loop body
LE: loop exit
PB: predicated region body
PF: predicated region fallthrough
CT: control target
= control target key end

     0   :  { %vm25_vm0 = vcmask 261120   ;;  %v191_v15 = vmov 0.0   ;;  %vm192_vm1 = vmmov 0   ;;  %s249_s0 = inlined_call_operand.vmem [shape: bf16[16,32], index: 0, kind: input, shape index: {}]   ;;  %s250_s3 = inlined_call_operand.vmem [shape: bf16[32,128], index: 3, kind: input, shape index: {}]   ;;  %s251_s1 = inlined_call_operand.vmem [shape: f32[1,32], index: 1, kind: input, shape index: {}]   ;;  %s252_s2 = inlined_call_operand.vmem [shape: f32[1,32], index: 2, kind: input, shape index: {}]   ;;  %s253_s4 = inlined_call_operand.vmem [shape: f32[1,128], index: 4, kind: input, shape index: {}]   ;;  %s254_s5 = inlined_call_operand.vmem [shape: bf16[16,128], index: 5, kind: output, shape index: {}]  }
   0x1   :  { %v164_v0 = vld [vmem:[%s249_s0] sm:$0xff]   ;;  %175 = vmatprep.subr.bf16.mxu0 %v191_v15  ;;  %v185_v16 = vld [vmem:[%s250_s3 + $0x8] sm:$0xff]   ;;  %179 = vmatprep.mubr.msk.bf16.mxu0 %vm192_vm1, %v191_v15 }
   0x2   :  { %v165_v1 = vunpack.c.l.bf16 %v164_v0  ;;  %v166_v2 = vunpack.c.h.bf16 %v164_v0  ;;  %176 = vmatpush3.bf16.msra.mxu0 %v185_v16  ;;  %v186_v17 = vld [vmem:[%s250_s3] sm:$0xff]  }
   0x3   :  { %177 = vmatprep.subr.bf16.mxu0 %v191_v15  ;;  %v153_v26 = vld [vmem:[%s251_s1] ss:$0 sm:$0xff] }
   0x4   :  { %v26_v3 = vsel %vm25_vm0, %v165_v1, 0.0  ;;  %v29_v4 = vsel %vm25_vm0, %v166_v2, 0.0  ;;  %v154_v30 = vld [vmem:[%s252_s2] ss:$0 sm:$0xff] }
   0x5   :  { %27 = vadd.xlane.f32.xlu0 %v26_v3  ;;  %v155_v36 = vld [vmem:[%s253_s4] ss:$0 sm:$0xff] }
   0x6   :  { %178 = vmatpush3.bf16.msra.mxu0 %v186_v17 }
   0x9   :  { %30 = vadd.xlane.f32.xlu0 %v29_v4 }
  0x8e   :  { %v28_v5 = vpop.xlane.xlu0 %27 }
  0x8f   :  { %v33_v6 = vmul.f32 0.03125, %v28_v5 }
  0x91   :  { %v35_v7 = vsub.f32 %v165_v1, %v33_v6 }
  0x92   :  { %v31_v8 = vpop.xlane.xlu0 %30 }
  0x93   :  { %v34_v9 = vmul.f32 0.03125, %v31_v8  ;;  %v37_v10 = vmul.f32 %v35_v7, %v35_v7 }
  0x95   :  { %v36_v11 = vsub.f32 %v166_v2, %v34_v9  ;;  %v39_v12 = vsel %vm25_vm0, %v37_v10, 0.0 }
  0x96   :  { %40 = vadd.xlane.f32.xlu1 %v39_v12 }
  0x97   :  { %v38_v13 = vmul.f32 %v36_v11, %v36_v11 }
  0x99   :  { %v42_v14 = vsel %vm25_vm0, %v38_v13, 0.0 }
  0x9a   :  { %43 = vadd.xlane.f32.xlu1 %v42_v14 }
 0x11f   :  { %v41_v18 = vpop.xlane.xlu1 %40 }
 0x120   :  { %v45_v19 = vmul.f32 0.03125, %v41_v18 }
 0x122   :  { %v47_v20 = vadd.f32 1e-06, %v45_v19 }
 0x123   :  { %v44_v21 = vpop.xlane.xlu1 %43 }
 0x124   :  { %187 = vrsqrt.f32 %v47_v20  ;;  %v46_v22 = vmul.f32 0.03125, %v44_v21 }
 0x126   :  { %v48_v23 = vadd.f32 1e-06, %v46_v22 }
 0x128   :  { %189 = vrsqrt.f32 %v48_v23 }
 0x131   :  { %v188_v24 = vpop.eup %187 }
 0x132   :  { %v51_v25 = vmul.f32 %v188_v24, %v35_v7 }
 0x134   :  { %v60_v29 = vmul.f32 %v153_v26, %v51_v25 }
 0x135   :  { %v190_v27 = vpop.eup %189 }
 0x136   :  { %v52_v28 = vmul.f32 %v190_v27, %v36_v11  ;;  %v69_v32 = vadd.f32 %v154_v30, %v60_v29 }
 0x138   :  { %v61_v31 = vmul.f32 %v153_v26, %v52_v28 }
 0x13a   :  { %v70_v33 = vadd.f32 %v154_v30, %v61_v31 }
 0x13c   :  { %v71_v34 = vpack.c.bf16 %v70_v33, %v69_v32 }
 0x13e   :  { %180 = vmatmul.mubr.msk.bf16.vlgmr.msra.gmra.mxu0 %vm25_vm0, %v71_v34 }
 0x1fe   :  { %v132_v35 = vpop.f32.mrf.mxu0 }
 0x1ff   :  { %v133_v39 = vadd.f32 %v155_v36, %v132_v35 }
 0x200   :  { %v181_v37 = vpop.f32.mrf.mxu0 }
 0x202   :  { %v135_v38 = vpop.f32.mrf.mxu0 }
 0x203   :  { %v136_v40 = vadd.f32 %v155_v36, %v135_v38 }
 0x204   :  { %v182_v41 = vpop.f32.mrf.mxu0 }
 0x205   :  { %v170_v42 = vpack.c.bf16 %v136_v40, %v133_v39 }
 0x207   :  { %171 = vst [vmem:[%s254_s5] sm:$0xff] %v170_v42  }

// kernel: depth_anything_forward.11
= control target key start
LH: loop header
LB: loop body
LE: loop exit
PB: predicated region body
PF: predicated region fallthrough
CT: control target
= control target key end

     0   :  { %v668_v36 = vmov 0.0   ;;  %vm669_vm0 = vmmov 0   ;;  %s825_s1 = inlined_call_operand.vmem [shape: bf16[640,128], index: 1, kind: input, shape index: {}]   ;;  %s826_s0 = inlined_call_operand.vmem [shape: bf16[8,640], index: 0, kind: input, shape index: {}]   ;;  %s827_s2 = inlined_call_operand.vmem [shape: f32[1,128], index: 2, kind: input, shape index: {}]   ;;  %s828_s3 = inlined_call_operand.vmem [shape: bf16[8,128], index: 3, kind: output, shape index: {}]  }
   0x1   :  { %v623_v0 = vld [vmem:[%s825_s1 + $0x78] sm:$0xff]   ;;  %v627_v4 = vld [vmem:[%s825_s1 + $0x70] sm:$0xff]   ;;  %v631_v8 = vld [vmem:[%s825_s1 + $0x68] sm:$0xff]  }
   0x2   :  { %v624_v1 = vld [vmem:[%s825_s1 + $0xf8] sm:$0xff]   ;;  %548 = vmatprep.subr.bf16.mxu0 %v623_v0  ;;  %v628_v5 = vld [vmem:[%s825_s1 + $0xf0] sm:$0xff]   ;;  %v632_v9 = vld [vmem:[%s825_s1 + $0xe8] sm:$0xff]  }
   0x3   :  { %v625_v2 = vld [vmem:[%s825_s1 + $0x38] sm:$0xff]   ;;  %570 = vmatprep.subr.bf16.mxu1 %v624_v1  ;;  %v629_v6 = vld [vmem:[%s825_s1 + $0x30] sm:$0xff]   ;;  %v633_v10 = vld [vmem:[%s825_s1 + $0x28] sm:$0xff]  }
   0x4   :  { %v626_v3 = vld [vmem:[%s825_s1 + $0xb8] sm:$0xff]   ;;  %549 = vmatpush3.bf16.msra.mxu0 %v625_v2  ;;  %v630_v7 = vld [vmem:[%s825_s1 + $0xb0] sm:$0xff]   ;;  %v634_v11 = vld [vmem:[%s825_s1 + $0xa8] sm:$0xff]  }
   0x5   :  { %571 = vmatpush3.bf16.msra.mxu1 %v626_v3  ;;  %550 = vmatprep.subr.bf16.mxu0 %v627_v4  ;;  %v635_v12 = vld [vmem:[%s825_s1 + $0x60] sm:$0xff]   ;;  %v639_v16 = vld [vmem:[%s825_s1 + $0x58] sm:$0xff]   ;;  %v643_v20 = vld [vmem:[%s825_s1 + $0x50] sm:$0xff]  }
   0x6   :  { %572 = vmatprep.subr.bf16.mxu1 %v628_v5  ;;  %v636_v13 = vld [vmem:[%s825_s1 + $0xe0] sm:$0xff]   ;;  %v640_v17 = vld [vmem:[%s825_s1 + $0xd8] sm:$0xff]   ;;  %v644_v21 = vld [vmem:[%s825_s1 + $0xd0] sm:$0xff]  }
   0x7   :  { %v637_v14 = vld [vmem:[%s825_s1 + $0x20] sm:$0xff]   ;;  %v641_v18 = vld [vmem:[%s825_s1 + $0x18] sm:$0xff]   ;;  %v645_v22 = vld [vmem:[%s825_s1 + $0x10] sm:$0xff]  }
   0x8   :  { %551 = vmatpush3.bf16.msra.mxu0 %v629_v6  ;;  %v638_v15 = vld [vmem:[%s825_s1 + $0xa0] sm:$0xff]   ;;  %v642_v19 = vld [vmem:[%s825_s1 + $0x98] sm:$0xff]   ;;  %v646_v23 = vld [vmem:[%s825_s1 + $0x90] sm:$0xff]  }
   0x9   :  { %573 = vmatpush3.bf16.msra.mxu1 %v630_v7  ;;  %552 = vmatprep.subr.bf16.mxu0 %v631_v8  ;;  %v647_v24 = vld [vmem:[%s825_s1 + $0x48] sm:$0xff]   ;;  %v651_v28 = vld [vmem:[%s825_s1 + $0x40] sm:$0xff]   ;;  %v660_v39 = vld [vmem:[%s825_s1 + $0x138] sm:$0xff]  }
   0xa   :  { %574 = vmatprep.subr.bf16.mxu1 %v632_v9  ;;  %v648_v25 = vld [vmem:[%s825_s1 + $0xc8] sm:$0xff]   ;;  %v652_v29 = vld [vmem:[%s825_s1 + $0xc0] sm:$0xff]   ;;  %v661_v40 = vld [vmem:[%s825_s1 + $0x130] sm:$0xff]  }
   0xb   :  { %v649_v26 = vld [vmem:[%s825_s1 + $0x8] sm:$0xff]   ;;  %v653_v30 = vld [vmem:[%s825_s1] sm:$0xff]   ;;  %v664_v43 = vld [vmem:[%s825_s1 + $0x118] sm:$0xff]  }
   0xc   :  { %553 = vmatpush3.bf16.msra.mxu0 %v633_v10  ;;  %v650_v27 = vld [vmem:[%s825_s1 + $0x88] sm:$0xff]   ;;  %v654_v31 = vld [vmem:[%s825_s1 + $0x80] sm:$0xff]   ;;  %v665_v44 = vld [vmem:[%s825_s1 + $0x110] sm:$0xff]  }
   0xd   :  { %575 = vmatpush3.bf16.msra.mxu1 %v634_v11  ;;  %554 = vmatprep.subr.bf16.mxu0 %v635_v12  ;;  %v21_v32 = vld [vmem:[%s826_s0] sm:$0xff]  ;;  %v22_v35 = vld [vmem:[%s826_s0 + $0x8] sm:$0xff]  ;;  %v657_v47 = vld [vmem:[%s826_s0 + $0x10] ss:$0 sps:$4 sm:$0xff]  }
   0xe   :  { %576 = vmatprep.subr.bf16.mxu1 %v636_v13  ;;  %v502_v33 = vcombine.low %v21_v32, %v21_v32  ;;  %v503_v34 = vcombine.high %v21_v32, %v21_v32  ;;  %v504_v37 = vcombine.low %v22_v35, %v22_v35  ;;  %v505_v38 = vcombine.high %v22_v35, %v22_v35  ;;  %v662_v41 = vld [vmem:[%s825_s1 + $0x128] sm:$0xff]   ;;  %v663_v42 = vld [vmem:[%s825_s1 + $0x120] sm:$0xff]  }
   0xf   :  { %v666_v45 = vld [vmem:[%s825_s1 + $0x108] sm:$0xff]   ;;  %v667_v46 = vld [vmem:[%s825_s1 + $0x100] sm:$0xff]  }
  0x10   :  { %555 = vmatpush3.bf16.msra.mxu0 %v637_v14  ;;  %394 = vmatprep.mubr.bf16.mxu0 %v503_v34  ;;  %v547_v60 = vld [vmem:[%s827_s2] ss:$0 sm:$0xff] }
  0x11   :  { %577 = vmatpush3.bf16.msra.mxu1 %v638_v15  ;;  %556 = vmatprep.subr.bf16.mxu0 %v639_v16 }
  0x12   :  { %578 = vmatprep.subr.bf16.mxu1 %v640_v17  ;;  %434 = vmatprep.mubr.bf16.mxu1 %v505_v38 }
  0x14   :  { %557 = vmatpush3.bf16.msra.mxu0 %v641_v18 }
  0x15   :  { %579 = vmatpush3.bf16.msra.mxu1 %v642_v19  ;;  %558 = vmatprep.subr.bf16.mxu0 %v643_v20 }
  0x16   :  { %580 = vmatprep.subr.bf16.mxu1 %v644_v21 }
  0x18   :  { %559 = vmatpush3.bf16.msra.mxu0 %v645_v22 }
  0x19   :  { %581 = vmatpush3.bf16.msra.mxu1 %v646_v23  ;;  %560 = vmatprep.subr.bf16.mxu0 %v647_v24 }
  0x1a   :  { %582 = vmatprep.subr.bf16.mxu1 %v648_v25 }
  0x1c   :  { %561 = vmatpush3.bf16.msra.mxu0 %v649_v26 }
  0x1d   :  { %583 = vmatpush3.bf16.msra.mxu1 %v650_v27  ;;  %562 = vmatprep.subr.bf16.mxu0 %v651_v28 }
  0x1e   :  { %584 = vmatprep.subr.bf16.mxu1 %v652_v29 }
  0x20   :  { %563 = vmatpush3.bf16.msra.mxu0 %v653_v30 }
  0x21   :  { %585 = vmatpush3.bf16.msra.mxu1 %v654_v31  ;;  %601 = vmatprep.subr.bf16.mxu0 %v668_v36 }
  0x23   :  { %395 = vmatmul.mubr.bf16.vlgmr.msra.gmra.mxu0 %v502_v33 }
  0x24   :  { %435 = vmatmul.mubr.bf16.vlgmr.msra.gmra.mxu1 %v504_v37  ;;  %602 = vmatpush3.bf16.msra.mxu0 %v660_v39 }
  0x25   :  { %603 = vmatprep.subr.bf16.mxu0 %v668_v36  ;;  %617 = vmatprep.mubr.msk.bf16.mxu0 %vm669_vm0, %v668_v36 }
  0x28   :  { %604 = vmatpush3.bf16.msra.mxu0 %v661_v40 }
  0x29   :  { %605 = vmatprep.subr.bf16.mxu0 %v668_v36 }
  0x2c   :  { %606 = vmatpush3.bf16.msra.mxu0 %v662_v41 }
  0x2d   :  { %607 = vmatprep.subr.bf16.mxu0 %v668_v36 }
  0x30   :  { %608 = vmatpush3.bf16.msra.mxu0 %v663_v42 }
  0x31   :  { %609 = vmatprep.subr.bf16.mxu0 %v668_v36 }
  0x34   :  { %610 = vmatpush3.bf16.msra.mxu0 %v664_v43 }
  0x35   :  { %611 = vmatprep.subr.bf16.mxu0 %v668_v36 }
  0x38   :  { %612 = vmatpush3.bf16.msra.mxu0 %v665_v44 }
  0x39   :  { %613 = vmatprep.subr.bf16.mxu0 %v668_v36 }
  0x3c   :  { %614 = vmatpush3.bf16.msra.mxu0 %v666_v45 }
  0x3d   :  { %615 = vmatprep.subr.bf16.mxu0 %v668_v36 }
  0x40   :  { %616 = vmatpush3.bf16.msra.mxu0 %v667_v46 }
  0x43   :  { %618 = vmatmul.mubr.bf16.vlgmr.msra.gmra.mxu0 %v657_v47 }
  0xe3   :  { %v564_v48 = vpop.f32.mrf.mxu0 }
  0xe4   :  { %v586_v49 = vpop.f32.mrf.mxu1 }
  0xe5   :  { %v565_v50 = vpop.f32.mrf.mxu0 }
  0xe6   :  { %v587_v51 = vpop.f32.mrf.mxu1  ;;  %v566_v56 = vadd.f32 %v565_v50, %v564_v48 }
  0xe7   :  { %v567_v52 = vpop.f32.mrf.mxu0  ;;  %v588_v57 = vadd.f32 %v587_v51, %v586_v49 }
  0xe8   :  { %v589_v53 = vpop.f32.mrf.mxu1 }
  0xe9   :  { %v568_v54 = vpop.f32.mrf.mxu0  ;;  %v437_v58 = vadd.f32 %v588_v57, %v566_v56 }
  0xea   :  { %v590_v55 = vpop.f32.mrf.mxu1 }
 0x103   :  { %v476_v59 = vpop.f32.mrf.mxu0 }
 0x104   :  { %v477_v61 = vadd.f32 %v476_v59, %v437_v58 }
 0x105   :  { %v619_v62 = vpop.f32.mrf.mxu0 }
 0x106   :  { %v495_v63 = vadd.f32 %v547_v60, %v477_v61 }
 0x107   :  { %v479_v0 = vpop.f32.mrf.mxu0 }
 0x108   :  { %v496_v1 = vpack.c.bf16 %v495_v63, %v495_v63 }
 0x109   :  { %v620_v2 = vpop.f32.mrf.mxu0 }
 0x10a   :  { %497 = vst [vmem:[%s828_s3] sm:$0xf] %v496_v1 }

// kernel: depth_anything_forward.13
= control target key start
LH: loop header
LB: loop body
LE: loop exit
PB: predicated region body
PF: predicated region fallthrough
CT: control target
= control target key end

     0   :  { %s782_s12 = smov 0   ;;  %s784_s13 = smov 0   ;;  %s858_s0 = inlined_call_operand.vmem [shape: bf16[2,2,8,16], index: 0, kind: input, shape index: {}]   ;;  %s859_s1 = inlined_call_operand.vmem [shape: bf16[2,2,8,16], index: 1, kind: input, shape index: {}]   ;;  %s860_s2 = inlined_call_operand.vmem [shape: bf16[2,2,8,16], index: 2, kind: input, shape index: {}]   ;;  %s861_s3 = inlined_call_operand.vmem [shape: bf16[2,2,8,16], index: 3, kind: output, shape index: {}]  }
   0x1   :  { %s786_s14 = smov 0   ;;  %s788_s15 = smov 0  }
   0x2   :  { %s790_s16 = smov 0  }
   0x3 LB: > { %s35_s17 = sadd.s32 1, %s748_s14  ;;  %s39_s18 = sadd.s32 1, %s752_s15  ;;  %s756_s16 = sphi %s790_s16, %s13_s16   ;;  %s752_s15 = sphi %s788_s15, %s865_s15   ;;  %s748_s14 = sphi %s786_s14, %s864_s14   ;;  %s744_s13 = sphi %s784_s13, %s863_s13   ;;  %s740_s12 = sphi %s782_s12, %s862_s12  }
   0x4   : > { %p37_p0 = scmp.ge.s32.totalorder %s35_s17, 2  ;;  %p637_p1 = scmp.ge.s32.totalorder %s756_s16, 1 }
   0x5   : > { %p217_p2 = scmp.lt.s32.totalorder %s756_s16, 5 }
   0x6   : > { %s867_s17 = smov (%p37_p0, %s35_s17), 0  ;;  %s869_s18 = smov (!%p37_p0, %s39_s18), %s752_s15 }
   0x7   : > { %p218_p3 = pnand %p637_p1, %p217_p2  ;;  %p41_p4 = scmp.ge.s32.totalorder %s869_s18, 2 }
   0x8   : > { %p275_p5 = scmp.lt.s32.totalorder (!%p218_p3), %s744_s13, 1  ;;  %p277_p6 = scmp.lt.s32.totalorder (!%p218_p3), %s740_s12, 1 }
   0x9   : > { %s871_s18 = smov (%p41_p4, %s869_s18), 0  ;;  %221 = sbr.rel (%p218_p3) target bundleno = 802 (0x322), region = 32 }
   0xe   : > { %vm327_vm0 = vcmask 130048   ;;  %v758_v0 = vmov 0.0   ;;  %vm759_vm1 = vmmov 0   ;;  %s873_s13 = smov (!%p275_p5, %s744_s13), 1  ;;  %s875_s12 = smov (!%p277_p6, %s740_s12), 1  ;;  %vm324_vm2 = vcmask 7168  }
   0xf   : > { %654 = vmatprep.subr.bf16.mxu0 %v758_v0  ;;  %328 = vst.msk [vmem:[#allocation4] sm:$0xff] %vm327_vm0, %v758_v0  ;;  %656 = vmatprep.mubr.msk.bf16.mxu0 %vm759_vm1, %v758_v0  ;;  %s638_s19 = sshll.u32 %s873_s13, 1  ;;  %v760_v4 = vmov -1e+30   ;;  %v381_v5 = vlaneseq  ;;  %vm388_vm4 = vcmask 64512   ;;  %v761_v14 = vmov 0  }
  0x10   : > { %660 = vmatprep.subr.bf16.mxu1 %v758_v0  ;;  %662 = vmatprep.mubr.msk.bf16.mxu1 %vm759_vm1, %v758_v0  ;;  %s283_s20 = sadd.s32 %s638_s19, %s875_s12  ;;  %325 = vst.msk [vmem:[#allocation2] sm:$0xff] %vm324_vm2, %v760_v4  ;;  %326 = vst.msk [vmem:[#allocation3] sm:$0xff] %vm324_vm2, %v758_v0  ;;  %vm424_vm5 = vcmask 1043456   ;;  %vm484_vm6 = vcmask 125952  }
  0x11   : > { %s813_s21 = sshll.u32 %s283_s20, 2  ;;  %v382_v6 = vand.u32 127, %v381_v5  ;;  %710 = vset.pattern.permute.xlu0 %v761_v14  ;;  %711 = vset.pattern.permute.xlu1 %v761_v14 }
  0x12   : > { %s296_s24 = scalar_lea.vmem %s859_s1, %s813_s21  ;;  %s285_s27 = scalar_lea.vmem %s858_s0, %s813_s21 }
  0x13   : > { %v330_v1 = vld [vmem:[%s296_s24] sm:$0xf]  ;;  %vm385_vm3 = vcmp.lt.s32.totalorder %v382_v6, 5  ;;  %s307_s30 = scalar_lea.vmem %s860_s2, %s813_s21  ;;  %s318_s6 = scalar_lea.vmem %s861_s3, %s813_s21 }
  0x14   : > { %v337_v2 = vsel %vm327_vm0, %v330_v1, 0  ;;  %v329_v3 = vld [vmem:[%s285_s27] sm:$0xf] }
  0x15   : > { %655 = vmatpush3.bf16.xpose.msra.mxu0 %v337_v2  ;;  %v331_v19 = vld [vmem:[%s307_s30] sm:$0xf] }
  0x16   : > { %v426_v20 = vsel %vm424_vm5, %v331_v19, 0  ;;  %v413_v40 = vld [vmem:[#allocation4] sm:$0xff] }
  0x17   : > { %v387_v15 = vld [vmem:[#allocation2] sm:$0xff]  ;;  %661 = vmatpush3.bf16.msra.mxu1 %v426_v20  ;;  %v405_v30 = vld [vmem:[#allocation3] sm:$0xff] }
  0x1c   : > { %657 = vmatmul.mubr.msk.bf16.vlgmr.msra.gmra.mxu0 %vm327_vm0, %v329_v3 }
  0xdc   : > { %v373_v7 = vpop.f32.mrf.mxu0 }
  0xdd   : > { %v379_v8 = vmul.f32 0.25, %v373_v7 }
  0xde   : > { %v658_v9 = vpop.f32.mrf.mxu0 }
  0xdf   : > { %v386_v10 = vsel %vm385_vm3, %v379_v8, -1e+30 }
  0xe0   : > { %v376_v11 = vpop.f32.mrf.mxu0  ;;  %v389_v12 = vsel %vm388_vm4, %v386_v10, -inf }
  0xe1   : > { %390 = vmax.xlane.f32.xlu0 %v389_v12 }
  0xe2   : > { %v659_v13 = vpop.f32.mrf.mxu0 }
 0x16a   : > { %v391_v16 = vpop.xlane.xlu0 %390 }
 0x16b   : > { %v392_v17 = vmax.f32 %v387_v15, %v391_v16 }
 0x16d   : > { %v393_v18 = vsub.f32 %v387_v15, %v392_v17  ;;  %470 = vst.msk [vmem:[#allocation2] sm:$0xff] %vm324_vm2, %v392_v17  ;;  %398 = vperm.xlu0 %710, %v392_v17  }
 0x16f   : > { %v394_v28 = vmul.f32 1.442695, %v393_v18 }
 0x1e8   : > { %v399_v21 = vpop.permute.xlu0 %398 }
 0x1e9   : > { %v401_v22 = vsub.f32 %v386_v10, %v399_v21 }
 0x1eb   : > { %v402_v23 = vmul.f32 1.442695, %v401_v22 }
 0x1ed   : > { %712 = vpow2.f32 %v402_v23 }
 0x1ee   : > { %714 = vpow2.f32 %v394_v28 }
 0x1fa   : > { %v713_v24 = vpop.eup %712 }
 0x1fb   : > { %v404_v25 = vsel %vm385_vm3, %v713_v24, 0.0  ;;  %v715_v29 = vpop.eup %714 }
 0x1fc   : > { %v407_v26 = vsel %vm388_vm4, %v404_v25, 0.0  ;;  %v420_v27 = vpack.c.bf16 %v404_v25, %v404_v25  ;;  %v406_v31 = vmul.f32 %v715_v29, %v405_v30 }
 0x1fd   : > { %408 = vadd.xlane.f32.xlu1 %v407_v26 }
 0x1fe   : > { %663 = vmatmul.mubr.msk.bf16.vlgmr.msra.gmra.mxu1 %vm388_vm4, %v420_v27 }
 0x286   : > { %v409_v32 = vpop.xlane.xlu1 %408 }
 0x287   : > { %v410_v33 = vadd.f32 %v409_v32, %v406_v31 }
 0x289   : > { %412 = vst.msk [vmem:[#allocation3] sm:$0xff] %vm324_vm2, %v410_v33 }
 0x290   : > { %v475_v34 = vld [vmem:[#allocation3] sm:$0xff] }
 0x291   : > { %478 = vperm.xlu1 %711, %v475_v34  }
 0x295   : > { %416 = vperm.xlu1 %711, %v715_v29  }
 0x2be   : > { %v462_v35 = vpop.f32.mrf.mxu1 }
 0x2c0   : > { %v664_v36 = vpop.f32.mrf.mxu1 }
 0x2c2   : > { %v465_v37 = vpop.f32.mrf.mxu1 }
 0x2c4   : > { %v665_v38 = vpop.f32.mrf.mxu1 }
 0x30c   : > { %v479_v39 = vpop.permute.xlu1 %478 }
 0x30d   : > { %716 = vrcp.f32 %v479_v39 }
 0x310   : > { %v417_v41 = vpop.permute.xlu1 %416 }
 0x311   : > { %v419_v42 = vmul.f32 %v417_v41, %v413_v40 }
 0x313   : > { %v468_v43 = vadd.f32 %v462_v35, %v419_v42 }
 0x315   : > { %469 = vst.msk [vmem:[#allocation4] sm:$0xff] %vm327_vm0, %v468_v43 }
 0x31a   : > { %v717_v44 = vpop.eup %716 }
 0x31c   : > { %v474_v45 = vld [vmem:[#allocation4] sm:$0xff] }
 0x31d   : > { %v482_v46 = vmul.f32 %v717_v44, %v474_v45 }
 0x31f   : > { %v483_v47 = vpack.c.bf16 %v482_v46, %v482_v46 }
 0x321   : > { %485 = vst.msk [vmem:[%s318_s6] sm:$0xf] %vm484_vm6, %v483_v47 }
 0x322 PF: > { %s13_s16 = sadd.s32 1, %s756_s16   ;;  %s862_s12 = smov %s748_s14 }
 0x323   : > { %p10_p7 = scmp.ge.s32.totalorder %s13_s16, 6   ;;  %s863_s13 = smov %s752_s15 }
 0x324   : > { %s864_s14 = smov %s867_s17  ;;  %s865_s15 = smov %s871_s18 }
 0x325   :  { %12 = sbr.rel (!%p10_p7) target bundleno = 3 (0x3), region = 76 }

// kernel: depth_anything_forward.14
= control target key start
LH: loop header
LB: loop body
LE: loop exit
PB: predicated region body
PF: predicated region fallthrough
CT: control target
= control target key end

     0   :  { %v240_v0 = vmov 0.0   ;;  %vm241_vm0 = vmmov 0   ;;  %s303_s1 = inlined_call_operand.vmem [shape: bf16[128,128], index: 1, kind: input, shape index: {}]   ;;  %s304_s0 = inlined_call_operand.vmem [shape: bf16[16,128], index: 0, kind: input, shape index: {}]   ;;  %s305_s2 = inlined_call_operand.vmem [shape: f32[1,128], index: 2, kind: input, shape index: {}]   ;;  %s306_s3 = inlined_call_operand.vmem [shape: bf16[16,128], index: 3, kind: input, shape index: {}]   ;;  %s307_s4 = inlined_call_operand.vmem [shape: bf16[16,128], index: 4, kind: output, shape index: {}]  }
   0x1   :  { %209 = vmatprep.subr.bf16.mxu0 %v240_v0  ;;  %v231_v1 = vld [vmem:[%s303_s1 + $0x38] sm:$0xff]   ;;  %225 = vmatprep.mubr.msk.bf16.mxu0 %vm241_vm0, %v240_v0  ;;  %v232_v2 = vld [vmem:[%s303_s1 + $0x30] sm:$0xff]   ;;  %v233_v3 = vld [vmem:[%s303_s1 + $0x28] sm:$0xff]  }
   0x2   :  { %210 = vmatpush3.bf16.msra.mxu0 %v231_v1  ;;  %v234_v4 = vld [vmem:[%s303_s1 + $0x20] sm:$0xff]   ;;  %v235_v5 = vld [vmem:[%s303_s1 + $0x18] sm:$0xff]   ;;  %v236_v6 = vld [vmem:[%s303_s1 + $0x10] sm:$0xff]  }
   0x3   :  { %211 = vmatprep.subr.bf16.mxu0 %v240_v0  ;;  %v237_v7 = vld [vmem:[%s303_s1 + $0x8] sm:$0xff]   ;;  %v238_v8 = vld [vmem:[%s303_s1] sm:$0xff]  }
   0x4   :  { %v239_v9 = vld [vmem:[%s304_s0] sm:$0xff]  }
   0x5   :  { %v186_v11 = vld [vmem:[%s305_s2] ss:$0 sm:$0xff] }
   0x6   :  { %212 = vmatpush3.bf16.msra.mxu0 %v232_v2  ;;  %v192_v12 = vld [vmem:[%s306_s3] sm:$0xff]  }
   0x7   :  { %213 = vmatprep.subr.bf16.mxu0 %v240_v0  ;;  %v193_v15 = vunpack.c.l.bf16 %v192_v12  ;;  %v194_v16 = vunpack.c.h.bf16 %v192_v12 }
   0xa   :  { %214 = vmatpush3.bf16.msra.mxu0 %v233_v3 }
   0xb   :  { %215 = vmatprep.subr.bf16.mxu0 %v240_v0 }
   0xe   :  { %216 = vmatpush3.bf16.msra.mxu0 %v234_v4 }
   0xf   :  { %217 = vmatprep.subr.bf16.mxu0 %v240_v0 }
  0x12   :  { %218 = vmatpush3.bf16.msra.mxu0 %v235_v5 }
  0x13   :  { %219 = vmatprep.subr.bf16.mxu0 %v240_v0 }
  0x16   :  { %220 = vmatpush3.bf16.msra.mxu0 %v236_v6 }
  0x17   :  { %221 = vmatprep.subr.bf16.mxu0 %v240_v0 }
  0x1a   :  { %222 = vmatpush3.bf16.msra.mxu0 %v237_v7 }
  0x1b   :  { %223 = vmatprep.subr.bf16.mxu0 %v240_v0 }
  0x1e   :  { %224 = vmatpush3.bf16.msra.mxu0 %v238_v8 }
  0x21   :  { %226 = vmatmul.mubr.bf16.vlgmr.msra.gmra.mxu0 %v239_v9 }
  0xe1   :  { %v132_v10 = vpop.f32.mrf.mxu0 }
  0xe2   :  { %v155_v14 = vadd.f32 %v186_v11, %v132_v10 }
  0xe3   :  { %v227_v13 = vpop.f32.mrf.mxu0 }
  0xe4   :  { %v161_v20 = vadd.f32 %v193_v15, %v155_v14 }
  0xe5   :  { %v135_v17 = vpop.f32.mrf.mxu0 }
  0xe6   :  { %v156_v18 = vadd.f32 %v186_v11, %v135_v17 }
  0xe7   :  { %v228_v19 = vpop.f32.mrf.mxu0 }
  0xe8   :  { %v162_v21 = vadd.f32 %v194_v16, %v156_v18 }
  0xea   :  { %v198_v22 = vpack.c.bf16 %v162_v21, %v161_v20 }
  0xec   :  { %199 = vst [vmem:[%s307_s4] sm:$0xff] %v198_v22  }

// kernel: depth_anything_forward.15
= control target key start
LH: loop header
LB: loop body
LE: loop exit
PB: predicated region body
PF: predicated region fallthrough
CT: control target
= control target key end

     0   :  { %vm31_vm0 = vcmask 261120   ;;  %v376_v15 = vmov 0.0   ;;  %vm377_vm1 = vmmov 0   ;;  %vm286_vm2 = vcmask 257024   ;;  %s484_s0 = inlined_call_operand.vmem [shape: bf16[16,32], index: 0, kind: input, shape index: {}]   ;;  %s485_s3 = inlined_call_operand.vmem [shape: bf16[32,128], index: 3, kind: input, shape index: {}]   ;;  %s486_s1 = inlined_call_operand.vmem [shape: f32[1,32], index: 1, kind: input, shape index: {}]   ;;  %s487_s2 = inlined_call_operand.vmem [shape: f32[1,32], index: 2, kind: input, shape index: {}]   ;;  %s488_s5 = inlined_call_operand.vmem [shape: bf16[128,32], index: 5, kind: input, shape index: {}]   ;;  %s489_s4 = inlined_call_operand.vmem [shape: f32[1,128], index: 4, kind: input, shape index: {}]   ;;  %s490_s6 = inlined_call_operand.vmem [shape: f32[1,32], index: 6, kind: input, shape index: {}]   ;;  %s491_s7 = inlined_call_operand.vmem [shape: bf16[16,32], index: 7, kind: output, shape index: {}]  }
   0x1   :  { %v313_v0 = vld [vmem:[%s484_s0] sm:$0xff]   ;;  %328 = vmatprep.subr.bf16.mxu0 %v376_v15  ;;  %v358_v16 = vld [vmem:[%s485_s3 + $0x8] sm:$0xff]   ;;  %332 = vmatprep.mubr.msk.bf16.mxu0 %vm377_vm1, %v376_v15  ;;  %v360_v35 = vld [vmem:[%s488_s5 + $0x38] sm:$0xff]  }
   0x2   :  { %v421_v1 = vunpack.c.l.bf16 %v313_v0  ;;  %v423_v2 = vunpack.c.h.bf16 %v313_v0  ;;  %336 = vmatprep.subr.bf16.mxu1 %v376_v15  ;;  %352 = vmatprep.mubr.msk.bf16.mxu1 %vm377_vm1, %v376_v15  ;;  %v359_v17 = vld [vmem:[%s485_s3] sm:$0xff]   ;;  %v361_v36 = vld [vmem:[%s488_s5 + $0x30] sm:$0xff]   ;;  %v362_v37 = vld [vmem:[%s488_s5 + $0x28] sm:$0xff]  }
   0x3   :  { %329 = vmatpush3.bf16.msra.mxu0 %v358_v16  ;;  %v293_v26 = vld [vmem:[%s486_s1] ss:$0 sm:$0xff]  ;;  %337 = vmatpush3.bf16.msra.mxu1 %v360_v35  ;;  %v364_v39 = vld [vmem:[%s488_s5 + $0x18] sm:$0xff]   ;;  %v365_v40 = vld [vmem:[%s488_s5 + $0x10] sm:$0xff]  }
   0x4   :  { %v32_v3 = vsel %vm31_vm0, %v421_v1, 0.0  ;;  %v35_v4 = vsel %vm31_vm0, %v423_v2, 0.0  ;;  %330 = vmatprep.subr.bf16.mxu0 %v376_v15  ;;  %v294_v30 = vld [vmem:[%s487_s2] ss:$0 sm:$0xff]  ;;  %338 = vmatprep.subr.bf16.mxu1 %v376_v15  ;;  %v366_v41 = vld [vmem:[%s488_s5 + $0x8] sm:$0xff]  }
   0x5   :  { %33 = vadd.xlane.f32.xlu0 %v32_v3  ;;  %v363_v38 = vld [vmem:[%s488_s5 + $0x20] sm:$0xff]  }
   0x6   :  { %v367_v42 = vld [vmem:[%s488_s5] sm:$0xff]  }
   0x7   :  { %331 = vmatpush3.bf16.msra.mxu0 %v359_v17  ;;  %339 = vmatpush3.bf16.msra.mxu1 %v361_v36  ;;  %v295_v43 = vld [vmem:[%s489_s4] ss:$0 sm:$0xff] }
   0x8   :  { %340 = vmatprep.subr.bf16.mxu1 %v376_v15 }
   0x9   :  { %36 = vadd.xlane.f32.xlu0 %v35_v4 }
   0xb   :  { %341 = vmatpush3.bf16.msra.mxu1 %v362_v37 }
   0xc   :  { %342 = vmatprep.subr.bf16.mxu1 %v376_v15 }
   0xf   :  { %343 = vmatpush3.bf16.msra.mxu1 %v363_v38 }
  0x10   :  { %344 = vmatprep.subr.bf16.mxu1 %v376_v15 }
  0x13   :  { %345 = vmatpush3.bf16.msra.mxu1 %v364_v39 }
  0x14   :  { %346 = vmatprep.subr.bf16.mxu1 %v376_v15 }
  0x17   :  { %347 = vmatpush3.bf16.msra.mxu1 %v365_v40 }
  0x18   :  { %348 = vmatprep.subr.bf16.mxu1 %v376_v15 }
  0x1b   :  { %349 = vmatpush3.bf16.msra.mxu1 %v366_v41 }
  0x1c   :  { %350 = vmatprep.subr.bf16.mxu1 %v376_v15 }
  0x1f   :  { %351 = vmatpush3.bf16.msra.mxu1 %v367_v42 }
  0x8e   :  { %v34_v5 = vpop.xlane.xlu0 %33 }
  0x8f   :  { %v39_v6 = vmul.f32 0.03125, %v34_v5 }
  0x91   :  { %v41_v7 = vsub.f32 %v421_v1, %v39_v6 }
  0x92   :  { %v37_v8 = vpop.xlane.xlu0 %36 }
  0x93   :  { %v40_v9 = vmul.f32 0.03125, %v37_v8  ;;  %v43_v10 = vmul.f32 %v41_v7, %v41_v7 }
  0x95   :  { %v42_v11 = vsub.f32 %v423_v2, %v40_v9  ;;  %v45_v12 = vsel %vm31_vm0, %v43_v10, 0.0 }
  0x96   :  { %46 = vadd.xlane.f32.xlu1 %v45_v12 }
  0x97   :  { %v44_v13 = vmul.f32 %v42_v11, %v42_v11 }
  0x99   :  { %v48_v14 = vsel %vm31_vm0, %v44_v13, 0.0 }
  0x9a   :  { %49 = vadd.xlane.f32.xlu1 %v48_v14 }
 0x11f   :  { %v47_v18 = vpop.xlane.xlu1 %46 }
 0x120   :  { %v51_v19 = vmul.f32 0.03125, %v47_v18 }
 0x122   :  { %v53_v20 = vadd.f32 1e-06, %v51_v19 }
 0x123   :  { %v50_v21 = vpop.xlane.xlu1 %49 }
 0x124   :  { %368 = vrsqrt.f32 %v53_v20  ;;  %v52_v22 = vmul.f32 0.03125, %v50_v21 }
 0x126   :  { %v54_v23 = vadd.f32 1e-06, %v52_v22 }
 0x128   :  { %370 = vrsqrt.f32 %v54_v23 }
 0x131   :  { %v369_v24 = vpop.eup %368 }
 0x132   :  { %v57_v25 = vmul.f32 %v369_v24, %v41_v7  ;;  %v299_v7 = vld [vmem:[%s490_s6] ss:$0 sm:$0xff] }
 0x134   :  { %v66_v29 = vmul.f32 %v293_v26, %v57_v25 }
 0x135   :  { %v371_v27 = vpop.eup %370 }
 0x136   :  { %v58_v28 = vmul.f32 %v371_v27, %v42_v11  ;;  %v75_v32 = vadd.f32 %v294_v30, %v66_v29 }
 0x138   :  { %v67_v31 = vmul.f32 %v293_v26, %v58_v28 }
 0x13a   :  { %v76_v33 = vadd.f32 %v294_v30, %v67_v31 }
 0x13c   :  { %v77_v34 = vpack.c.bf16 %v76_v33, %v75_v32 }
 0x13e   :  { %333 = vmatmul.mubr.msk.bf16.vlgmr.msra.gmra.mxu0 %vm31_vm0, %v77_v34 }
 0x1fe   :  { %v138_v44 = vpop.f32.mrf.mxu0 }
 0x1ff   :  { %v139_v45 = vadd.f32 %v295_v43, %v138_v44 }
 0x200   :  { %v334_v46 = vpop.f32.mrf.mxu0 }
 0x201   :  { %v145_v47 = vmul.f32 %v139_v45, %v139_v45 }
 0x202   :  { %v141_v48 = vpop.f32.mrf.mxu0 }
 0x203   :  { %v147_v49 = vmul.f32 %v145_v47, %v139_v45  ;;  %v142_v50 = vadd.f32 %v295_v43, %v141_v48 }
 0x204   :  { %v335_v51 = vpop.f32.mrf.mxu0 }
 0x205   :  { %v149_v52 = vmul.f32 0.044715, %v147_v49  ;;  %v146_v53 = vmul.f32 %v142_v50, %v142_v50 }
 0x207   :  { %v151_v54 = vadd.f32 %v149_v52, %v139_v45  ;;  %v148_v55 = vmul.f32 %v146_v53, %v142_v50 }
 0x209   :  { %v153_v56 = vmul.f32 0.7978846, %v151_v54  ;;  %v150_v57 = vmul.f32 0.044715, %v148_v55 }
 0x20b   :  { %372 = vtanh.f32 %v153_v56  ;;  %v152_v58 = vadd.f32 %v150_v57, %v142_v50 }
 0x20d   :  { %v154_v59 = vmul.f32 0.7978846, %v152_v58 }
 0x20f   :  { %374 = vtanh.f32 %v154_v59 }
 0x218   :  { %v373_v60 = vpop.eup %372 }
 0x219   :  { %v157_v61 = vadd.f32 1.0, %v373_v60 }
 0x21b   :  { %v159_v0 = vmul.f32 0.5, %v157_v61 }
 0x21c   :  { %v375_v62 = vpop.eup %374 }
 0x21d   :  { %v158_v63 = vadd.f32 1.0, %v375_v62  ;;  %v161_v4 = vmul.f32 %v159_v0, %v139_v45 }
 0x21f   :  { %v160_v3 = vmul.f32 0.5, %v158_v63 }
 0x221   :  { %v162_v5 = vmul.f32 %v160_v3, %v142_v50 }
 0x223   :  { %v163_v6 = vpack.c.bf16 %v162_v5, %v161_v4 }
 0x225   :  { %353 = vmatmul.mubr.bf16.vlgmr.msra.gmra.mxu1 %v163_v6 }
 0x2e5   :  { %v269_v8 = vpop.f32.mrf.mxu1 }
 0x2e6   :  { %v270_v9 = vadd.f32 %v299_v7, %v269_v8 }
 0x2e7   :  { %v354_v10 = vpop.f32.mrf.mxu1 }
 0x2e8   :  { %v276_v11 = vadd.f32 %v421_v1, %v270_v9 }
 0x2e9   :  { %v272_v12 = vpop.f32.mrf.mxu1 }
 0x2ea   :  { %v310_v13 = vpack.c.bf16 %v276_v11, %v276_v11  ;;  %v273_v14 = vadd.f32 %v299_v7, %v272_v12 }
 0x2eb   :  { %v355_v15 = vpop.f32.mrf.mxu1 }
 0x2ec   :  { %287 = vst.msk [vmem:[%s491_s7] sm:$0xf] %vm286_vm2, %v310_v13  ;;  %v277_v16 = vadd.f32 %v423_v2, %v273_v14 }
 0x2ee   :  { %v311_v17 = vpack.c.bf16 %v277_v16, %v277_v16 }
 0x2f0   :  { %288 = vst.msk [vmem:[%s491_s7 + $0x4] sm:$0xf] %vm286_vm2, %v311_v17 }

// kernel: depth_anything_forward.20
= control target key start
LH: loop header
LB: loop body
LE: loop exit
PB: predicated region body
PF: predicated region fallthrough
CT: control target
= control target key end

     0   :  { %s893_s29 = smov 0   ;;  %s895_s30 = smov 0   ;;  %s963_s0 = inlined_call_operand.vmem [shape: bf16[2,8,32], index: 0, kind: input, shape index: {}]   ;;  %s964_s1 = inlined_call_operand.vmem [shape: bf16[2,8,32], index: 1, kind: input, shape index: {}]   ;;  %s965_s2 = inlined_call_operand.vmem [shape: f32[2,1,32], index: 2, kind: input, shape index: {}]   ;;  %s966_s3 = inlined_call_operand.vmem [shape: f32[2,1,32], index: 3, kind: input, shape index: {}]   ;;  %s967_s4 = inlined_call_operand.vmem [shape: bf16[32,32], index: 4, kind: input, shape index: {}]   ;;  %s968_s5 = inlined_call_operand.vmem [shape: bf16[32,32], index: 5, kind: input, shape index: {}]   ;;  %s969_s6 = inlined_call_operand.vmem [shape: f32[1,32], index: 6, kind: input, shape index: {}]   ;;  %s970_s7 = inlined_call_operand.<no memory space> [shape: f32[1,1], index: 7, kind: input, shape index: {}]   ;;  %s971_s8 = inlined_call_operand.vmem [shape: f32[2,1,8], index: 8, kind: output, shape index: {}]  }
   0x1   :  { %v13_v0 = vstv %s970_s7  ;;  %s897_s9 = smov 0  }
   0x2   :  { %14 = vst [vmem:[#allocation2] sm:$0x1] %v13_v0 }
   0x3 LB: > { %s32_s7 = sadd.s32 1, %s836_s30  ;;  %p738_p0 = scmp.ge.s32.totalorder %s840_s9, 1  ;;  %s840_s9 = sphi %s897_s9, %s20_s9   ;;  %s836_s30 = sphi %s895_s30, %s973_s30   ;;  %s832_s29 = sphi %s893_s29, %s972_s29  }
   0x4   : > { %p34_p1 = scmp.ge.s32.totalorder %s32_s7, 2  ;;  %p312_p2 = scmp.lt.s32.totalorder %s840_s9, 3 }
   0x6   : > { %s975_s7 = smov (%p34_p1, %s32_s7), 0  ;;  %p313_p3 = pnand %p738_p0, %p312_p2 }
   0x7   : > { %p362_p4 = scmp.lt.s32.totalorder (!%p313_p3), %s832_s29, 1 }
   0x8   : > { %316 = sbr.rel (%p313_p3) target bundleno = 449 (0x1c1), region = 52 }
   0xd   : > { %v810_v1 = vld [vmem:[%s967_s4 + $0x8] sm:$0xff]   ;;  %v842_v2 = vmov 0.0   ;;  %v812_v4 = vld [vmem:[%s967_s4] sm:$0xff]   ;;  %vm843_vm0 = vmmov 0   ;;  %s977_s29 = smov (!%p362_p4, %s832_s29), 1  ;;  %vm413_vm1 = vcmask 261120   ;;  %v551_v42 = vlaneseq }
   0xe   : > { %761 = vmatprep.subr.bf16.mxu0 %v842_v2  ;;  %769 = vmatprep.subr.bf16.mxu1 %v842_v2  ;;  %v811_v3 = vld [vmem:[%s968_s5 + $0x8] sm:$0xff]   ;;  %v813_v5 = vld [vmem:[%s968_s5] sm:$0xff]   ;;  %s739_s18 = sshll.u32 %s977_s29, 2  ;;  %v844_v9 = vmov 0   ;;  %s378_s27 = scalar_lea.vmem %s965_s2, %s977_s29  ;;  %vm631_vm2 = vcmask 57344  }
   0xf   : > { %762 = vmatpush3.bf16.msra.mxu0 %v810_v1  ;;  %765 = vmatprep.mubr.msk.bf16.mxu0 %vm843_vm0, %v842_v2  ;;  %s368_s21 = scalar_lea.vmem %s963_s0, %s739_s18  ;;  %s375_s24 = scalar_lea.vmem %s964_s1, %s739_s18  ;;  %v545_v8 = vld [vmem:[#allocation2] sm:$0x1]  ;;  %v552_v43 = vshrl.u32 %v551_v42, 7 }
  0x10   : > { %770 = vmatpush3.bf16.msra.mxu1 %v811_v3  ;;  %763 = vmatprep.subr.bf16.mxu0 %v842_v2  ;;  %v389_v6 = vld [vmem:[%s368_s21] sm:$0xf]  ;;  %s381_s11 = scalar_lea.vmem %s966_s3, %s977_s29  ;;  %s387_s16 = scalar_lea.vmem %s971_s8, %s977_s29 }
  0x11   : > { %771 = vmatprep.subr.bf16.mxu1 %v842_v2  ;;  %773 = vmatprep.mubr.msk.bf16.mxu1 %vm843_vm0, %v842_v2  ;;  %v467_v7 = vld [vmem:[%s375_s24] sm:$0xf]  ;;  %v553_v44 = vsub.s32 0, %v552_v43 }
  0x12   : > { %809 = vset.pattern.permute.xlu0 %v844_v9  ;;  %v741_v10 = vld [vmem:[%s378_s27] ss:$0 sm:$0xff] }
  0x13   : > { %764 = vmatpush3.bf16.msra.mxu0 %v812_v4  ;;  %548 = vperm.xlu0 %809, %v545_v8   ;;  %v745_v11 = vld [vmem:[%s381_s11] ss:$0 sm:$0xff] }
  0x14   : > { %772 = vmatpush3.bf16.msra.mxu1 %v813_v5  ;;  %777 = vmatprep.subr.mxu0 %v842_v2  ;;  %v544_v41 = vld [vmem:[%s969_s6] sm:$0x1] }
  0x16   : > { %766 = vmatmul.mubr.msk.bf16.vlgmr.msra.gmra.mxu0 %vm413_vm1, %v389_v6 }
  0x17   : > { %774 = vmatmul.mubr.msk.bf16.vlgmr.msra.gmra.mxu1 %vm413_vm1, %v467_v7  ;;  %779 = vmatprep.mubr.msk.f32.mxu0 %vm843_vm0, %v842_v2 }
  0x8e   : > { %v549_v45 = vpop.permute.xlu0 %548 }
  0x8f   : > { %v554_v46 = vrot.slane %v549_v45, %v553_v44 }
  0xd6   : > { %v451_v12 = vpop.f32.mrf.mxu0 }
  0xd7   : > { %v452_v13 = vadd.f32 %v741_v10, %v451_v12  ;;  %v528_v14 = vpop.f32.mrf.mxu1 }
  0xd8   : > { %v529_v15 = vadd.f32 %v745_v11, %v528_v14  ;;  %v767_v16 = vpop.f32.mrf.mxu0 }
  0xd9   : > { %v457_v17 = vmul.f32 %v452_v13, %v452_v13  ;;  %v775_v18 = vpop.f32.mrf.mxu1 }
  0xda   : > { %v534_v19 = vmul.f32 %v529_v15, %v529_v15  ;;  %v454_v20 = vpop.f32.mrf.mxu0 }
  0xdb   : > { %v458_v21 = vmul.f32 %v457_v17, %v452_v13  ;;  %v531_v22 = vpop.f32.mrf.mxu1 }
  0xdc   : > { %v535_v23 = vmul.f32 %v534_v19, %v529_v15  ;;  %v768_v24 = vpop.f32.mrf.mxu0 }
  0xdd   : > { %v459_v25 = vmul.f32 0.044715, %v458_v21  ;;  %v776_v26 = vpop.f32.mrf.mxu1 }
  0xde   : > { %v536_v27 = vmul.f32 0.044715, %v535_v23 }
  0xdf   : > { %v460_v28 = vadd.f32 %v459_v25, %v452_v13 }
  0xe0   : > { %v537_v29 = vadd.f32 %v536_v27, %v529_v15 }
  0xe1   : > { %v461_v30 = vmul.f32 0.7978846, %v460_v28 }
  0xe2   : > { %v538_v31 = vmul.f32 0.7978846, %v537_v29 }
  0xe3   : > { %814 = vtanh.f32 %v461_v30 }
  0xe4   : > { %816 = vtanh.f32 %v538_v31 }
  0xf0   : > { %v815_v32 = vpop.eup %814 }
  0xf1   : > { %v817_v33 = vpop.eup %816  ;;  %v463_v34 = vadd.f32 1.0, %v815_v32 }
  0xf2   : > { %v540_v35 = vadd.f32 1.0, %v817_v33 }
  0xf3   : > { %v464_v36 = vmul.f32 0.5, %v463_v34 }
  0xf4   : > { %v541_v37 = vmul.f32 0.5, %v540_v35 }
  0xf5   : > { %v465_v38 = vmul.f32 %v464_v36, %v452_v13 }
  0xf6   : > { %v542_v39 = vmul.f32 %v541_v37, %v529_v15 }
  0xf8   : > { %v543_v40 = vadd.f32 %v542_v39, %v465_v38 }
  0xfa   : > { %778 = vmatpush3.xpose.msk.msra.mxu0 %vm413_vm1, %v543_v40 }
  0xfd   : > { %780 = vmatmul.mubr.msk.f32.vlgmr.msra.gmra.mxu0 %vm413_vm1, %v544_v41 }
 0x1bd   : > { %v627_v47 = vpop.f32.mrf.mxu0 }
 0x1be   : > { %v628_v48 = vadd.f32 %v627_v47, %v554_v46 }
 0x1bf   : > { %v781_v49 = vpop.f32.mrf.mxu0 }
 0x1c0   : > { %632 = vst.msk [vmem:[%s387_s16] sm:$0x1] %vm631_vm2, %v628_v48 }
 0x1c1 PF: > { %s20_s9 = sadd.s32 1, %s840_s9   ;;  %s972_s29 = smov %s836_s30 }
 0x1c2   : > { %p17_p5 = scmp.ge.s32.totalorder %s20_s9, 4   ;;  %s973_s30 = smov %s975_s7 }
 0x1c4   :  { %19 = sbr.rel (!%p17_p5) target bundleno = 3 (0x3), region = 91 }

// kernel: depth_anything_forward.21
= control target key start
LH: loop header
LB: loop body
LE: loop exit
PB: predicated region body
PF: predicated region fallthrough
CT: control target
= control target key end

     0   :  { %s437_s12 = smov 0   ;;  %s467_s0 = inlined_call_operand.vmem [shape: bf16[2,2,2], index: 0, kind: input, shape index: {}]   ;;  %s468_s1 = inlined_call_operand.vmem [shape: bf16[28,2], index: 1, kind: input, shape index: {}]   ;;  %s469_s2 = inlined_call_operand.vmem [shape: bf16[2,28], index: 2, kind: input, shape index: {}]   ;;  %s470_s3 = inlined_call_operand.vmem [shape: f32[2,28,28], index: 3, kind: output, shape index: {}]  }
   0x1 LB: > { %s361_s13 = sadd.s32 4294967295, %s414_s12   ;;  %p365_p0 = scmp.ge.s32.totalorder %s414_s12, 1  ;;  %s414_s12 = sphi %s437_s12, %s13_s12  }
   0x2   : > { %p135_p1 = scmp.lt.s32.totalorder %s414_s12, 3 }
   0x4   : > { %p136_p2 = pnand %p365_p0, %p135_p1 }
   0x5   : > { %p157_p3 = scmp.lt.s32.totalorder (!%p136_p2), %s361_s13, 1 }
   0x6   : > { %139 = sbr.rel (%p136_p2) target bundleno = 422 (0x1a6), region = 32 }
   0xb   : > { %v406_v0 = vld [vmem:[%s468_s1] sm:$0xff]   ;;  %vm182_vm0 = vcmask 15360   ;;  %s472_s13 = smov (!%p157_p3, %s361_s13), 1  ;;  %vm189_vm1 = vcmask 1040384   ;;  %v416_v2 = vmov 0   ;;  %vm303_vm2 = vcmask 228352  }
   0xc   : > { %385 = vmatprep.mubr.msk.bf16.mxu0 %vm182_vm0, %v406_v0  ;;  %s159_s18 = scalar_lea.vmem %s467_s0, %s472_s13  ;;  %v407_v5 = vld [vmem:[%s468_s1 + $0x8] sm:$0x3f]   ;;  %v244_v6 = vld [vmem:[%s469_s2] sm:$0x1]  ;;  %s376_s23 = sshll.u32 %s472_s13, 5  ;;  %vm307_vm3 = vcmask 224256  }
   0xd   : > { %v166_v1 = vld [vmem:[%s159_s18] sm:$0x1]  ;;  %396 = vmatprep.subr.msk.bf16.mxu1 %vm189_vm1, %v244_v6  ;;  %v252_v7 = vsel %vm189_vm1, %v244_v6, 0  ;;  %s164_s26 = scalar_lea.vmem %s470_s3, %s376_s23 }
   0xe   : > { %v167_v3 = vmax.bf16 %v416_v2, %v166_v1  ;;  %390 = vmatpush3.bf16.msra.mxu1 %v252_v7 }
  0x10   : > { %395 = vmatprep.subr.msk.bf16.mxu0 %vm189_vm1, %v167_v3  ;;  %v191_v4 = vsel %vm189_vm1, %v167_v3, 0 }
  0x11   : > { %384 = vmatpush3.bf16.msra.mxu0 %v191_v4 }
  0x14   : > { %386 = vmatmul.mubr.msk.bf16.vlgmr.msra.gmra.mxu0 %vm182_vm0, %v407_v5 }
  0xd4   : > { %v387_v8 = vpop.f32.mrf.mxu0 }
  0xd6   : > { %v227_v9 = vpop.f32.mrf.mxu0 }
  0xd8   : > { %v388_v10 = vpop.f32.mrf.mxu0 }
  0xd9   : > { %v243_v13 = vpack.c.bf16 %v388_v10, %v387_v8 }
  0xda   : > { %v230_v11 = vpop.f32.mrf.mxu0 }
  0xdb   : > { %v242_v12 = vpack.c.bf16 %v230_v11, %v227_v9 }
  0xdd   : > { %391 = vmatprep.mubr.msk.bf16.mxu1 %vm182_vm0, %v242_v12 }
  0xde   : > { %392 = vmatmul.mubr.msk.bf16.vlgmr.msra.gmra.mxu1 %vm182_vm0, %v243_v13 }
 0x19e   : > { %v393_v14 = vpop.f32.mrf.mxu1 }
 0x19f   : > { %306 = vst.msk [vmem:[%s164_s26 + $0x10] sm:$0xff] %vm303_vm2, %v393_v14 }
 0x1a0   : > { %v288_v15 = vpop.f32.mrf.mxu1 }
 0x1a1   : > { %304 = vst.msk [vmem:[%s164_s26] sm:$0xff] %vm303_vm2, %v288_v15 }
 0x1a2   : > { %v394_v16 = vpop.f32.mrf.mxu1 }
 0x1a3   : > { %308 = vst.msk [vmem:[%s164_s26 + $0x18] sm:$0xf] %vm307_vm3, %v394_v16 }
 0x1a4   : > { %v291_v17 = vpop.f32.mrf.mxu1 }
 0x1a5   : > { %305 = vst.msk [vmem:[%s164_s26 + $0x8] sm:$0xff] %vm303_vm2, %v291_v17 }
 0x1a6 PF: > { %s13_s12 = sadd.s32 1, %s414_s12  }
 0x1a7   : > { %p10_p4 = scmp.ge.s32.totalorder %s13_s12, 4  }
 0x1a9   :  { %12 = sbr.rel (!%p10_p4) target bundleno = 1 (0x1), region = 62 }

</bundles_post_ra>
